<compile_context>
chip_gen: v7x
topology: tpu7x:2x2x1
jax: 0.10.0
libtpu: 0.0.40
codegen_flags: <defaults>
</compile_context>

<pallas_src>
import functools
import numpy as np
import jax
import jax.numpy as jnp
from jax.experimental import pallas as pl
from jax.experimental.pallas import tpu as pltpu

# Default MXU precision (bf16 passes, f32 accumulation) per earlier perf feedback.
DOT = functools.partial(jnp.dot, preferred_element_type=jnp.float32)


def _round_up(x, m):
    return (x + m - 1) // m * m


def _block_diag(a, b):
    ra, ca = a.shape
    rb, cb = b.shape
    top = jnp.concatenate([a, jnp.zeros((ra, cb), a.dtype)], axis=1)
    bot = jnp.concatenate([jnp.zeros((rb, ca), b.dtype), b], axis=1)
    return jnp.concatenate([top, bot], axis=0)


def _fuse_mlp_pair(p_a, p_b):
    """Fuse two 2-layer MLPs sharing the same input into one MLP whose output is
    [out_a | out_b]: layer-1 column-concat, layer-2 block-diagonal."""
    w1a, b1a, w2a, b2a = p_a
    w1b, b1b, w2b, b2b = p_b
    w1 = jnp.concatenate([w1a, w1b], axis=1)
    b1 = jnp.concatenate([b1a, b1b], axis=1)
    w2 = _block_diag(w2a, w2b)
    b2 = jnp.concatenate([b2a, b2b], axis=1)
    return w1, b1, w2, b2


def _pad_cols(a, width):
    return jnp.zeros((a.shape[0], width), a.dtype).at[:, :a.shape[1]].set(a)


def _pad_rows(a, height):
    return jnp.zeros((height, a.shape[1]), a.dtype).at[:a.shape[0], :].set(a)


# ---------------------------------------------------------------------------
# Fused kernel: phase A = row-parallel path, phase B = Markov prior recurrence
# ---------------------------------------------------------------------------
def fused_kernel(x_tile_ref, x_full_ref, eps_ref,
                 w1c_ref, b1c_ref, qw2_ref, qb2_ref, lzw_ref, lzb_ref,
                 hwz_ref, owp_ref, obp_ref,
                 p0w1_ref, p0b1_ref, p0w2_ref, p0b2_ref,
                 pw1ms_ref, pw1x_ref, pb1_ref, pw2_ref, pb2_ref,
                 comb_ref, ps_ref, *, H, B, T, R):
    i = pl.program_id(0)
    H2 = 2 * H

    # ----------------- phase A (steps 0..R-1): per-row parallel path ----------------
    @pl.when(i < R)
    def _row_phase():
        x = x_tile_ref[...]                                       # (tile_n, Di)
        # X is pushed through the MXU once: [q-layer1(mu|sigma) | hidden X-part]
        xw = DOT(x, w1c_ref[...]) + b1c_ref[...]                  # (tile_n, 3H)
        hq = jnp.maximum(xw[:, :H2], 0.0)                         # fused q hidden
        hx = xw[:, H2:]                                           # X @ hw_x + hb (pre-relu)
        q = DOT(hq, qw2_ref[...]) + qb2_ref[...]                  # (tile_n, 2H) = [mu_q|sigma_q]
        z = q[:, :H] + jnp.exp(q[:, H:] * 0.5) * eps_ref[...]
        tz = jnp.maximum(DOT(z, lzw_ref[...]) + lzb_ref[...], 0.0)
        h = jnp.maximum(hx + DOT(tz, hwz_ref[...]), 0.0)
        y = DOT(h, owp_ref[...]) + obp_ref[...]                   # zero-padded output cols
        # single unmasked, lane-dense (width % 128 == 0) store
        comb_ref[...] = jnp.concatenate([q, y], axis=-1)

    # ----------------- phase B (step R): Markov prior recurrence over t -------------
    @pl.when(i == R)
    def _rec_phase():
        xf = x_full_ref[...]                                      # (N, Di), row = b*T + t
        # Hoisted x-contribution of layer-1: ONE matmul with M = B*T instead of T
        # tiny in-chain matmuls (perf-review item).  Bias folded in.
        xw1 = DOT(xf, pw1x_ref[...]) + pb1_ref[...]               # (N, 2H)
        w1ms = pw1ms_ref[...]                                     # (PSW, 2H), zero rows past 2H
        w2 = pw2_ref[...]                                         # (2H, PSW), zero cols past 2H
        b2 = pb2_ref[...]                                         # (1, PSW)

        def gather_t(arr, t):
            # rows [b*T + t for b] of a batch-major flat array; B/T/t static -> static slices
            return jnp.concatenate(
                [arr[b * T + t:b * T + t + 1, :] for b in range(B)], axis=0)

        def store_t(t, val):
            # scatter the (B, PSW) timestep result back to batch-major rows (static slices)
            for b in range(B):
                ps_ref[b * T + t:b * T + t + 1, :] = val[b:b + 1, :]

        # t = 0: fused p_mu_0 / p_sigma_0 (layer-2 padded to PSW lanes)
        x0 = gather_t(xf, 0)                                      # (B, Di)
        h0 = jnp.maximum(DOT(x0, p0w1_ref[...]) + p0b1_ref[...], 0.0)
        prev = DOT(h0, p0w2_ref[...]) + p0b2_ref[...]             # (B, PSW) = [mu|sigma|0]
        store_t(0, prev)

        # t >= 1: the serial dependency chain is only 2 matmuls per step
        for t in range(1, T):
            h1 = jnp.maximum(DOT(prev, w1ms) + gather_t(xw1, t), 0.0)
            prev = DOT(h1, w2) + b2                               # (B, PSW)
            store_t(t, prev)


# ---------------------------------------------------------------------------
# Wrapper
# ---------------------------------------------------------------------------
def markov_vae_ctc_forward(X, eps, params):
    B, T, Di = X.shape
    H = params['q_mu'][0].shape[1]
    Do = params['out'][0].shape[1]
    N = B * T
    H2 = 2 * H
    f32 = jnp.float32

    # ---------------- row-path fused weights ----------------
    qw1f, qb1f, qw2f, qb2f = _fuse_mlp_pair(params['q_mu'], params['q_sigma'])
    lzw, lzb = params['linear_z']
    hw, hb = params['hidden']
    hwx, hwz = hw[:Di, :], hw[Di:, :]
    ow, ob = params['out']
    # X goes through the MXU once per tile: [q layer-1 | hidden X-part]
    w1c = jnp.concatenate([qw1f, hwx], axis=1)                    # (Di, 3H)
    b1c = jnp.concatenate([qb1f, hb], axis=1)                     # (1, 3H)
    # packed lane-dense output [mu_q | sigma_q | y | 0-pad], width % 128 == 0
    Cpad = _round_up(H2 + Do, 128)
    owp = _pad_cols(ow, Cpad - H2)
    obp = _pad_cols(ob, Cpad - H2)

    # ---------------- recurrence fused weights ----------------
    PSW = _round_up(H2, 128)                                      # lane-dense state / store width
    p0w1, p0b1, p0w2, p0b2 = _fuse_mlp_pair(params['p_mu_0'], params['p_sigma_0'])
    pw1, pb1, pw2, pb2 = _fuse_mlp_pair(params['p_mu'], params['p_sigma'])
    pw1ms, pw1x = pw1[:H2, :], pw1[H2:, :]                        # [mu|sigma] rows / x rows
    p0w2p, p0b2p = _pad_cols(p0w2, PSW), _pad_cols(p0b2, PSW)
    pw2p, pb2p = _pad_cols(pw2, PSW), _pad_cols(pb2, PSW)
    pw1msp = _pad_rows(pw1ms, PSW)                                # zero rows eat the state's pad lanes

    # ---------------- grid / tiling ----------------
    # tile_n up to 1024 rows (amortizes ~0.35us/step; ~86% HBM roofline); with
    # Cpad=128 the double-buffered in+out footprint stays well under v7x VMEM.
    tile_n = min(1024, _round_up(N, 8))
    R = pl.cdiv(N, tile_n)                                        # number of row tiles
    grid = (R + 1,)                                               # +1 dedicated recurrence step
    # grid >= 2 always, so "parallel" actually shards the two phases across
    # v7x's two TensorCores (no effect / no cost on v5e/v6e).

    x_full = X.reshape(N, Di)
    # pad to (R+1) tiles so every grid step maps to a valid block; the trailing
    # dummy tile/block is discarded in the wrapper.
    x_tiled = jnp.pad(x_full, ((0, (R + 1) * tile_n - N), (0, 0)))

    row_weights = (w1c, b1c, qw2f, qb2f, lzw, lzb, hwz, owp, obp)
    rec_weights = (p0w1, p0b1, p0w2p, p0b2p, pw1msp, pw1x, pb1, pw2p, pb2p)

    def resident(a):
        # grid-invariant block: fetched once, stays VMEM-resident across the grid.
        # TODO(synk): mark pipeline_mode=pl.Buffered(1) once single-buffered
        # operands are universally supported; only matters for very large H.
        return pl.BlockSpec(a.shape, lambda i: (0, 0))

    in_specs = ([pl.BlockSpec((tile_n, Di), lambda i: (i, 0)),    # streamed row tiles
                 resident(x_full),                                # whole X for the recurrence
                 resident(eps)]
                + [resident(w) for w in row_weights]
                + [resident(w) for w in rec_weights])
    # TODO(synk): x_full (and the hoisted (N, 2H) xw1 value) are whole-array VMEM
    # resident; chunk the recurrence over T blocks with carried state if
    # production B*T grows beyond a few MiB (v7x has 64 MiB VMEM).

    out_specs = (
        # packed per-row output; block R (touched only by the recurrence step's
        # unwritten buffer) is a discarded dummy -> race-free under megacore split.
        pl.BlockSpec((tile_n, Cpad), lambda i: (i, 0)),
        # recurrence output: real data in block 0 (written only by step R);
        # row steps map to dummy block 1 so they can never clobber it.
        pl.BlockSpec((None, N, PSW), lambda i: (jnp.where(i == R, 0, 1), 0, 0)),
    )

    out_shape = (jax.ShapeDtypeStruct(((R + 1) * tile_n, Cpad), f32),
                 jax.ShapeDtypeStruct((2, N, PSW), f32))

    comb, ps = pl.pallas_call(
        functools.partial(fused_kernel, H=H, B=B, T=T, R=R),
        grid=grid,
        in_specs=in_specs,
        out_specs=out_specs,
        out_shape=out_shape,
        compiler_params=pltpu.CompilerParams(
            dimension_semantics=("parallel",)),
    )(x_tiled, x_full, eps, *row_weights, *rec_weights)

    # TODO(synk): downstream consumers should read the packed (N, 128) slabs
    # directly; these slices/reshapes only exist to match the 5-tuple interface.
    comb = comb[:N]
    mu_q = comb[:, :H].reshape(B, T, H)
    sigma_q = comb[:, H:H2].reshape(B, T, H)
    y = comb[:, H2:H2 + Do].reshape(B, T, Do)
    ps0 = ps[0]                                                   # (N, PSW), row = b*T + t
    mu_p = ps0[:, :H].reshape(B, T, H)
    sigma_p = ps0[:, H:H2].reshape(B, T, H)
    return y, mu_p, sigma_p, mu_q, sigma_q


# ---------------------------------------------------------------------------
# Pure-JAX reference (mirrors the PyTorch forward exactly, unfused weights)
# ---------------------------------------------------------------------------
def _mlp(x, w1, b1, w2, b2):
    h = jnp.maximum(DOT(x, w1) + b1, 0.0)
    return DOT(h, w2) + b2


def reference_forward(X, eps, params):
    B, T, Di = X.shape
    H = params['q_mu'][0].shape[1]
    mu_q = _mlp(X, *params['q_mu'])
    sigma_q = _mlp(X, *params['q_sigma'])
    Z = mu_q + jnp.exp(sigma_q / 2.0) * eps[0]
    mu_p = jnp.zeros((B, T, H), jnp.float32)
    sigma_p = jnp.zeros((B, T, H), jnp.float32)
    mu_p = mu_p.at[:, 0].set(_mlp(X[:, 0], *params['p_mu_0']))
    sigma_p = sigma_p.at[:, 0].set(_mlp(X[:, 0], *params['p_sigma_0']))
    for t in range(1, T):
        tilde = jnp.concatenate([mu_p[:, t - 1], sigma_p[:, t - 1], X[:, t]], axis=-1)
        mu_p = mu_p.at[:, t].set(_mlp(tilde, *params['p_mu']))
        sigma_p = sigma_p.at[:, t].set(_mlp(tilde, *params['p_sigma']))
    lz_w, lz_b = params['linear_z']
    tilde_Z = jnp.maximum(DOT(Z, lz_w) + lz_b, 0.0)
    hw, hb = params['hidden']
    tX = jnp.concatenate([X, tilde_Z], axis=2)
    tX = jnp.maximum(DOT(tX, hw) + hb, 0.0)
    ow, ob = params['out']
    return DOT(tX, ow) + ob, mu_p, sigma_p, mu_q, sigma_q


# ---------------------------------------------------------------------------
# Deterministic parameter init (shapes from ModelMarkovVaeCtc.__init__)
# ---------------------------------------------------------------------------
def init_params(key, Di, H, Do):
    def lin(k, din, dout):
        k1, k2 = jax.random.split(k)
        s = 1.0 / np.sqrt(din)
        w = jax.random.uniform(k1, (din, dout), jnp.float32, -s, s)
        b = jax.random.uniform(k2, (1, dout), jnp.float32, -s, s)
        return w, b

    def mlp_params(k, din, dh):
        ka, kb = jax.random.split(k)
        return (*lin(ka, din, dh), *lin(kb, dh, dh))

    keys = jax.random.split(key, 9)
    return {
        'p_mu_0':    mlp_params(keys[0], Di, H),
        'p_sigma_0': mlp_params(keys[1], Di, H),
        'p_mu':      mlp_params(keys[2], Di + 2 * H, H),
        'p_sigma':   mlp_params(keys[3], Di + 2 * H, H),
        'q_mu':      mlp_params(keys[4], Di, H),
        'q_sigma':   mlp_params(keys[5], Di, H),
        'linear_z':  lin(keys[6], H, H),
        'hidden':    lin(keys[7], Di + H, H),
        'out':       lin(keys[8], H, Do),
    }


if __name__ == "__main__":
    B, T, Di, H, Do = 2, 8, 16, 32, 8

    key = jax.random.PRNGKey(0)
    k_param, k_x, k_eps = jax.random.split(key, 3)
    params = init_params(k_param, Di, H, Do)
    X = jax.random.normal(k_x, (B, T, Di), jnp.float32)
    # epsilon ~ randn(dim_vae_hidden); drawn in host glue (RNG is not the hot path)
    eps = jax.random.normal(k_eps, (1, H), jnp.float32)

    fwd = jax.jit(markov_vae_ctc_forward)
    outs = jax.block_until_ready(fwd(X, eps, params))
    refs = jax.block_until_ready(reference_forward(X, eps, params))

    # Tolerance accounts for default-precision (bf16-pass) MXU matmuls in the kernel
    # vs whatever pass count XLA picks for the reference's matmuls.
    for o, r in zip(outs, refs):
        np.testing.assert_allclose(np.asarray(o), np.asarray(r), rtol=5e-2, atol=5e-2)

    print("KERNEL_OK")
</pallas_src>

<mosaic_0001>
module attributes {stable_mosaic.version = 11 : i64} {
  func.func @fused_kernel(%arg0: i32, %arg1: memref<16x16xf32, #tpu.memory_space<vmem>>, %arg2: memref<16x16xf32, #tpu.memory_space<vmem>>, %arg3: memref<1x32xf32, #tpu.memory_space<vmem>>, %arg4: memref<16x96xf32, #tpu.memory_space<vmem>>, %arg5: memref<1x96xf32, #tpu.memory_space<vmem>>, %arg6: memref<64x64xf32, #tpu.memory_space<vmem>>, %arg7: memref<1x64xf32, #tpu.memory_space<vmem>>, %arg8: memref<32x32xf32, #tpu.memory_space<vmem>>, %arg9: memref<1x32xf32, #tpu.memory_space<vmem>>, %arg10: memref<32x32xf32, #tpu.memory_space<vmem>>, %arg11: memref<32x64xf32, #tpu.memory_space<vmem>>, %arg12: memref<1x64xf32, #tpu.memory_space<vmem>>, %arg13: memref<16x64xf32, #tpu.memory_space<vmem>>, %arg14: memref<1x64xf32, #tpu.memory_space<vmem>>, %arg15: memref<64x128xf32, #tpu.memory_space<vmem>>, %arg16: memref<1x128xf32, #tpu.memory_space<vmem>>, %arg17: memref<128x64xf32, #tpu.memory_space<vmem>>, %arg18: memref<16x64xf32, #tpu.memory_space<vmem>>, %arg19: memref<1x64xf32, #tpu.memory_space<vmem>>, %arg20: memref<64x128xf32, #tpu.memory_space<vmem>>, %arg21: memref<1x128xf32, #tpu.memory_space<vmem>>, %arg22: memref<16x128xf32, #tpu.memory_space<vmem>>, %arg23: memref<1x16x128xf32, #tpu.memory_space<vmem>>) attributes {dimension_semantics = [#tpu.dimension_semantics<parallel>], iteration_bounds = array<i64: 2>, scalar_prefetch = 0 : i64, scratch_operands = 0 : i64, tpu.core_type = #tpu.core_type<tc>, window_params = [{transform_indices = @transform_0, window_bounds = array<i64: 16, 16>}, {pipeline_mode = #tpu.pipeline_mode<synchronous>, transform_indices = @transform_1, window_bounds = array<i64: 16, 16>}, {pipeline_mode = #tpu.pipeline_mode<synchronous>, transform_indices = @transform_2, window_bounds = array<i64: 1, 32>}, {pipeline_mode = #tpu.pipeline_mode<synchronous>, transform_indices = @transform_3, window_bounds = array<i64: 16, 96>}, {pipeline_mode = #tpu.pipeline_mode<synchronous>, transform_indices = @transform_4, window_bounds = array<i64: 1, 96>}, {pipeline_mode = #tpu.pipeline_mode<synchronous>, transform_indices = @transform_5, window_bounds = array<i64: 64, 64>}, {pipeline_mode = #tpu.pipeline_mode<synchronous>, transform_indices = @transform_6, window_bounds = array<i64: 1, 64>}, {pipeline_mode = #tpu.pipeline_mode<synchronous>, transform_indices = @transform_7, window_bounds = array<i64: 32, 32>}, {pipeline_mode = #tpu.pipeline_mode<synchronous>, transform_indices = @transform_8, window_bounds = array<i64: 1, 32>}, {pipeline_mode = #tpu.pipeline_mode<synchronous>, transform_indices = @transform_9, window_bounds = array<i64: 32, 32>}, {pipeline_mode = #tpu.pipeline_mode<synchronous>, transform_indices = @transform_10, window_bounds = array<i64: 32, 64>}, {pipeline_mode = #tpu.pipeline_mode<synchronous>, transform_indices = @transform_11, window_bounds = array<i64: 1, 64>}, {pipeline_mode = #tpu.pipeline_mode<synchronous>, transform_indices = @transform_12, window_bounds = array<i64: 16, 64>}, {pipeline_mode = #tpu.pipeline_mode<synchronous>, transform_indices = @transform_13, window_bounds = array<i64: 1, 64>}, {pipeline_mode = #tpu.pipeline_mode<synchronous>, transform_indices = @transform_14, window_bounds = array<i64: 64, 128>}, {pipeline_mode = #tpu.pipeline_mode<synchronous>, transform_indices = @transform_15, window_bounds = array<i64: 1, 128>}, {pipeline_mode = #tpu.pipeline_mode<synchronous>, transform_indices = @transform_16, window_bounds = array<i64: 128, 64>}, {pipeline_mode = #tpu.pipeline_mode<synchronous>, transform_indices = @transform_17, window_bounds = array<i64: 16, 64>}, {pipeline_mode = #tpu.pipeline_mode<synchronous>, transform_indices = @transform_18, window_bounds = array<i64: 1, 64>}, {pipeline_mode = #tpu.pipeline_mode<synchronous>, transform_indices = @transform_19, window_bounds = array<i64: 64, 128>}, {pipeline_mode = #tpu.pipeline_mode<synchronous>, transform_indices = @transform_20, window_bounds = array<i64: 1, 128>}, {transform_indices = @transform_21, window_bounds = array<i64: 16, 128>}, {transform_indices = @transform_22, window_bounds = array<i64: 1, 16, 128>}]} {
    %c1_i32 = arith.constant 1 : i32
    %0 = arith.cmpi slt, %arg0, %c1_i32 : i32
    %1 = arith.extui %0 : i1 to i32
    %c0_i32 = arith.constant 0 : i32
    %2 = arith.cmpi ne, %1, %c0_i32 : i32
    scf.if %2 {
      %c0 = arith.constant 0 : index
      %c0_2 = arith.constant 0 : index
      %6 = vector.load %arg1[%c0, %c0_2] : memref<16x16xf32, #tpu.memory_space<vmem>>, vector<16x16xf32>
      %c0_3 = arith.constant 0 : index
      %c0_4 = arith.constant 0 : index
      %7 = vector.load %arg4[%c0_3, %c0_4] : memref<16x96xf32, #tpu.memory_space<vmem>>, vector<16x96xf32>
      %cst = arith.constant dense<0.000000e+00> : vector<16x96xf32>
      %8 = tpu.matmul %6, %7, %cst {dimension_numbers = #tpu.dot_dimension_numbers<[1], [0], [0], [1], [0, 0, 1, 1], [], []>} : vector<16x16xf32>, vector<16x96xf32>, vector<16x96xf32> -> vector<16x96xf32>
      %c0_5 = arith.constant 0 : index
      %c0_6 = arith.constant 0 : index
      %9 = vector.load %arg5[%c0_5, %c0_6] : memref<1x96xf32, #tpu.memory_space<vmem>>, vector<1x96xf32>
      %10 = vector.broadcast %9 : vector<1x96xf32> to vector<16x96xf32>
      %11 = arith.addf %8, %10 : vector<16x96xf32>
      %12 = vector.extract_strided_slice %11 {offsets = [0, 0], sizes = [16, 64], strides = [1, 1]} : vector<16x96xf32> to vector<16x64xf32>
      %cst_7 = arith.constant 0.000000e+00 : f32
      %13 = vector.broadcast %cst_7 : f32 to vector<16x64xf32>
      %14 = arith.maximumf %12, %13 : vector<16x64xf32>
      %15 = vector.extract_strided_slice %11 {offsets = [0, 64], sizes = [16, 32], strides = [1, 1]} : vector<16x96xf32> to vector<16x32xf32>
      %c0_8 = arith.constant 0 : index
      %c0_9 = arith.constant 0 : index
      %16 = vector.load %arg6[%c0_8, %c0_9] : memref<64x64xf32, #tpu.memory_space<vmem>>, vector<64x64xf32>
      %cst_10 = arith.constant dense<0.000000e+00> : vector<16x64xf32>
      %17 = tpu.matmul %14, %16, %cst_10 {dimension_numbers = #tpu.dot_dimension_numbers<[1], [0], [0], [1], [0, 0, 1, 1], [], []>} : vector<16x64xf32>, vector<64x64xf32>, vector<16x64xf32> -> vector<16x64xf32>
      %c0_11 = arith.constant 0 : index
      %c0_12 = arith.constant 0 : index
      %18 = vector.load %arg7[%c0_11, %c0_12] : memref<1x64xf32, #tpu.memory_space<vmem>>, vector<1x64xf32>
      %19 = vector.broadcast %18 : vector<1x64xf32> to vector<16x64xf32>
      %20 = arith.addf %17, %19 : vector<16x64xf32>
      %21 = vector.extract_strided_slice %20 {offsets = [0, 0], sizes = [16, 32], strides = [1, 1]} : vector<16x64xf32> to vector<16x32xf32>
      %22 = vector.extract_strided_slice %20 {offsets = [0, 32], sizes = [16, 32], strides = [1, 1]} : vector<16x64xf32> to vector<16x32xf32>
      %cst_13 = arith.constant 5.000000e-01 : f32
      %23 = vector.broadcast %cst_13 : f32 to vector<16x32xf32>
      %24 = arith.mulf %22, %23 : vector<16x32xf32>
      %25 = math.exp %24 : vector<16x32xf32>
      %c0_14 = arith.constant 0 : index
      %c0_15 = arith.constant 0 : index
      %26 = vector.load %arg3[%c0_14, %c0_15] : memref<1x32xf32, #tpu.memory_space<vmem>>, vector<1x32xf32>
      %27 = vector.broadcast %26 : vector<1x32xf32> to vector<16x32xf32>
      %28 = arith.mulf %25, %27 : vector<16x32xf32>
      %29 = arith.addf %21, %28 : vector<16x32xf32>
      %c0_16 = arith.constant 0 : index
      %c0_17 = arith.constant 0 : index
      %30 = vector.load %arg8[%c0_16, %c0_17] : memref<32x32xf32, #tpu.memory_space<vmem>>, vector<32x32xf32>
      %cst_18 = arith.constant dense<0.000000e+00> : vector<16x32xf32>
      %31 = tpu.matmul %29, %30, %cst_18 {dimension_numbers = #tpu.dot_dimension_numbers<[1], [0], [0], [1], [0, 0, 1, 1], [], []>} : vector<16x32xf32>, vector<32x32xf32>, vector<16x32xf32> -> vector<16x32xf32>
      %c0_19 = arith.constant 0 : index
      %c0_20 = arith.constant 0 : index
      %32 = vector.load %arg9[%c0_19, %c0_20] : memref<1x32xf32, #tpu.memory_space<vmem>>, vector<1x32xf32>
      %33 = vector.broadcast %32 : vector<1x32xf32> to vector<16x32xf32>
      %34 = arith.addf %31, %33 : vector<16x32xf32>
      %cst_21 = arith.constant 0.000000e+00 : f32
      %35 = vector.broadcast %cst_21 : f32 to vector<16x32xf32>
      %36 = arith.maximumf %34, %35 : vector<16x32xf32>
      %c0_22 = arith.constant 0 : index
      %c0_23 = arith.constant 0 : index
      %37 = vector.load %arg10[%c0_22, %c0_23] : memref<32x32xf32, #tpu.memory_space<vmem>>, vector<32x32xf32>
      %cst_24 = arith.constant dense<0.000000e+00> : vector<16x32xf32>
      %38 = tpu.matmul %36, %37, %cst_24 {dimension_numbers = #tpu.dot_dimension_numbers<[1], [0], [0], [1], [0, 0, 1, 1], [], []>} : vector<16x32xf32>, vector<32x32xf32>, vector<16x32xf32> -> vector<16x32xf32>
      %39 = arith.addf %15, %38 : vector<16x32xf32>
      %cst_25 = arith.constant 0.000000e+00 : f32
      %40 = vector.broadcast %cst_25 : f32 to vector<16x32xf32>
      %41 = arith.maximumf %39, %40 : vector<16x32xf32>
      %c0_26 = arith.constant 0 : index
      %c0_27 = arith.constant 0 : index
      %42 = vector.load %arg11[%c0_26, %c0_27] : memref<32x64xf32, #tpu.memory_space<vmem>>, vector<32x64xf32>
      %cst_28 = arith.constant dense<0.000000e+00> : vector<16x64xf32>
      %43 = tpu.matmul %41, %42, %cst_28 {dimension_numbers = #tpu.dot_dimension_numbers<[1], [0], [0], [1], [0, 0, 1, 1], [], []>} : vector<16x32xf32>, vector<32x64xf32>, vector<16x64xf32> -> vector<16x64xf32>
      %c0_29 = arith.constant 0 : index
      %c0_30 = arith.constant 0 : index
      %44 = vector.load %arg12[%c0_29, %c0_30] : memref<1x64xf32, #tpu.memory_space<vmem>>, vector<1x64xf32>
      %45 = vector.broadcast %44 : vector<1x64xf32> to vector<16x64xf32>
      %46 = arith.addf %43, %45 : vector<16x64xf32>
      %47 = tpu.concatenate %20, %46 in 1 : vector<16x64xf32>, vector<16x64xf32> -> vector<16x128xf32>
      %c0_31 = arith.constant 0 : index
      %c0_32 = arith.constant 0 : index
      %48 = vector.load %arg22[%c0_31, %c0_32] : memref<16x128xf32, #tpu.memory_space<vmem>>, vector<16x128xf32>
      tpu.vector_store %arg22[%c0_31, %c0_32], %47 {strides = array<i32>} : memref<16x128xf32, #tpu.memory_space<vmem>>, vector<16x128xf32>,
    } else {
    }
    %c1_i32_0 = arith.constant 1 : i32
    %3 = arith.cmpi eq, %arg0, %c1_i32_0 : i32
    %4 = arith.extui %3 : i1 to i32
    %c0_i32_1 = arith.constant 0 : i32
    %5 = arith.cmpi ne, %4, %c0_i32_1 : i32
    scf.if %5 {
      %c0 = arith.constant 0 : index
      %c0_2 = arith.constant 0 : index
      %6 = vector.load %arg2[%c0, %c0_2] : memref<16x16xf32, #tpu.memory_space<vmem>>, vector<16x16xf32>
      %c0_3 = arith.constant 0 : index
      %c0_4 = arith.constant 0 : index
      %7 = vector.load %arg18[%c0_3, %c0_4] : memref<16x64xf32, #tpu.memory_space<vmem>>, vector<16x64xf32>
      %cst = arith.constant dense<0.000000e+00> : vector<16x64xf32>
      %8 = tpu.matmul %6, %7, %cst {dimension_numbers = #tpu.dot_dimension_numbers<[1], [0], [0], [1], [0, 0, 1, 1], [], []>} : vector<16x16xf32>, vector<16x64xf32>, vector<16x64xf32> -> vector<16x64xf32>
      %c0_5 = arith.constant 0 : index
      %c0_6 = arith.constant 0 : index
      %9 = vector.load %arg19[%c0_5, %c0_6] : memref<1x64xf32, #tpu.memory_space<vmem>>, vector<1x64xf32>
      %10 = vector.broadcast %9 : vector<1x64xf32> to vector<16x64xf32>
      %11 = arith.addf %8, %10 : vector<16x64xf32>
      %c0_7 = arith.constant 0 : index
      %c0_8 = arith.constant 0 : index
      %12 = vector.load %arg17[%c0_7, %c0_8] : memref<128x64xf32, #tpu.memory_space<vmem>>, vector<128x64xf32>
      %c0_9 = arith.constant 0 : index
      %c0_10 = arith.constant 0 : index
      %13 = vector.load %arg20[%c0_9, %c0_10] : memref<64x128xf32, #tpu.memory_space<vmem>>, vector<64x128xf32>
      %c0_11 = arith.constant 0 : index
      %c0_12 = arith.constant 0 : index
      %14 = vector.load %arg21[%c0_11, %c0_12] : memref<1x128xf32, #tpu.memory_space<vmem>>, vector<1x128xf32>
      %15 = vector.extract_strided_slice %6 {offsets = [0, 0], sizes = [1, 16], strides = [1, 1]} : vector<16x16xf32> to vector<1x16xf32>
      %16 = vector.extract_strided_slice %6 {offsets = [8, 0], sizes = [1, 16], strides = [1, 1]} : vector<16x16xf32> to vector<1x16xf32>
      %17 = tpu.concatenate %15, %16 in 0 : vector<1x16xf32>, vector<1x16xf32> -> vector<2x16xf32>
      %c0_13 = arith.constant 0 : index
      %c0_14 = arith.constant 0 : index
      %18 = vector.load %arg13[%c0_13, %c0_14] : memref<16x64xf32, #tpu.memory_space<vmem>>, vector<16x64xf32>
      %cst_15 = arith.constant dense<0.000000e+00> : vector<2x64xf32>
      %19 = tpu.matmul %17, %18, %cst_15 {dimension_numbers = #tpu.dot_dimension_numbers<[1], [0], [0], [1], [0, 0, 1, 1], [], []>} : vector<2x16xf32>, vector<16x64xf32>, vector<2x64xf32> -> vector<2x64xf32>
      %c0_16 = arith.constant 0 : index
      %c0_17 = arith.constant 0 : index
      %20 = vector.load %arg14[%c0_16, %c0_17] : memref<1x64xf32, #tpu.memory_space<vmem>>, vector<1x64xf32>
      %21 = vector.broadcast %20 : vector<1x64xf32> to vector<2x64xf32>
      %22 = arith.addf %19, %21 : vector<2x64xf32>
      %cst_18 = arith.constant 0.000000e+00 : f32
      %23 = vector.broadcast %cst_18 : f32 to vector<2x64xf32>
      %24 = arith.maximumf %22, %23 : vector<2x64xf32>
      %c0_19 = arith.constant 0 : index
      %c0_20 = arith.constant 0 : index
      %25 = vector.load %arg15[%c0_19, %c0_20] : memref<64x128xf32, #tpu.memory_space<vmem>>, vector<64x128xf32>
      %cst_21 = arith.constant dense<0.000000e+00> : vector<2x128xf32>
      %26 = tpu.matmul %24, %25, %cst_21 {dimension_numbers = #tpu.dot_dimension_numbers<[1], [0], [0], [1], [0, 0, 1, 1], [], []>} : vector<2x64xf32>, vector<64x128xf32>, vector<2x128xf32> -> vector<2x128xf32>
      %c0_22 = arith.constant 0 : index
      %c0_23 = arith.constant 0 : index
      %27 = vector.load %arg16[%c0_22, %c0_23] : memref<1x128xf32, #tpu.memory_space<vmem>>, vector<1x128xf32>
      %28 = vector.broadcast %27 : vector<1x128xf32> to vector<2x128xf32>
      %29 = arith.addf %26, %28 : vector<2x128xf32>
      %30 = vector.extract_strided_slice %29 {offsets = [0, 0], sizes = [1, 128], strides = [1, 1]} : vector<2x128xf32> to vector<1x128xf32>
      %c0_24 = arith.constant 0 : index
      %c0_25 = arith.constant 0 : index
      %c0_26 = arith.constant 0 : index
      %31 = vector.load %arg23[%c0_24, %c0_25, %c0_26] : memref<1x16x128xf32, #tpu.memory_space<vmem>>, vector<1x1x128xf32>
      %32 = vector.shape_cast %31 : vector<1x1x128xf32> to vector<1x128xf32>
      %33 = vector.shape_cast %30 : vector<1x128xf32> to vector<1x1x128xf32>
      tpu.vector_store %arg23[%c0_24, %c0_25, %c0_26], %33 {strides = array<i32>} : memref<1x16x128xf32, #tpu.memory_space<vmem>>, vector<1x1x128xf32>,
      %34 = vector.extract_strided_slice %29 {offsets = [1, 0], sizes = [1, 128], strides = [1, 1]} : vector<2x128xf32> to vector<1x128xf32>
      %c0_27 = arith.constant 0 : index
      %c8 = arith.constant 8 : index
      %c0_28 = arith.constant 0 : index
      %35 = vector.load %arg23[%c0_27, %c8, %c0_28] : memref<1x16x128xf32, #tpu.memory_space<vmem>>, vector<1x1x128xf32>
      %36 = vector.shape_cast %35 : vector<1x1x128xf32> to vector<1x128xf32>
      %37 = vector.shape_cast %34 : vector<1x128xf32> to vector<1x1x128xf32>
      tpu.vector_store %arg23[%c0_27, %c8, %c0_28], %37 {strides = array<i32>} : memref<1x16x128xf32, #tpu.memory_space<vmem>>, vector<1x1x128xf32>,
      %cst_29 = arith.constant dense<0.000000e+00> : vector<2x64xf32>
      %38 = tpu.matmul %29, %12, %cst_29 {dimension_numbers = #tpu.dot_dimension_numbers<[1], [0], [0], [1], [0, 0, 1, 1], [], []>} : vector<2x128xf32>, vector<128x64xf32>, vector<2x64xf32> -> vector<2x64xf32>
      %39 = vector.extract_strided_slice %11 {offsets = [1, 0], sizes = [1, 64], strides = [1, 1]} : vector<16x64xf32> to vector<1x64xf32>
      %40 = vector.extract_strided_slice %11 {offsets = [9, 0], sizes = [1, 64], strides = [1, 1]} : vector<16x64xf32> to vector<1x64xf32>
      %41 = tpu.concatenate %39, %40 in 0 : vector<1x64xf32>, vector<1x64xf32> -> vector<2x64xf32>
      %42 = arith.addf %38, %41 : vector<2x64xf32>
      %cst_30 = arith.constant 0.000000e+00 : f32
      %43 = vector.broadcast %cst_30 : f32 to vector<2x64xf32>
      %44 = arith.maximumf %42, %43 : vector<2x64xf32>
      %cst_31 = arith.constant dense<0.000000e+00> : vector<2x128xf32>
      %45 = tpu.matmul %44, %13, %cst_31 {dimension_numbers = #tpu.dot_dimension_numbers<[1], [0], [0], [1], [0, 0, 1, 1], [], []>} : vector<2x64xf32>, vector<64x128xf32>, vector<2x128xf32> -> vector<2x128xf32>
      %46 = vector.broadcast %14 : vector<1x128xf32> to vector<2x128xf32>
      %47 = arith.addf %45, %46 : vector<2x128xf32>
      %48 = vector.extract_strided_slice %47 {offsets = [0, 0], sizes = [1, 128], strides = [1, 1]} : vector<2x128xf32> to vector<1x128xf32>
      %c0_32 = arith.constant 0 : index
      %c1 = arith.constant 1 : index
      %c0_33 = arith.constant 0 : index
      %49 = vector.load %arg23[%c0_32, %c1, %c0_33] : memref<1x16x128xf32, #tpu.memory_space<vmem>>, vector<1x1x128xf32>
      %50 = vector.shape_cast %49 : vector<1x1x128xf32> to vector<1x128xf32>
      %51 = vector.shape_cast %48 : vector<1x128xf32> to vector<1x1x128xf32>
      tpu.vector_store %arg23[%c0_32, %c1, %c0_33], %51 {strides = array<i32>} : memref<1x16x128xf32, #tpu.memory_space<vmem>>, vector<1x1x128xf32>,
      %52 = vector.extract_strided_slice %47 {offsets = [1, 0], sizes = [1, 128], strides = [1, 1]} : vector<2x128xf32> to vector<1x128xf32>
      %c0_34 = arith.constant 0 : index
      %c9 = arith.constant 9 : index
      %c0_35 = arith.constant 0 : index
      %53 = vector.load %arg23[%c0_34, %c9, %c0_35] : memref<1x16x128xf32, #tpu.memory_space<vmem>>, vector<1x1x128xf32>
      %54 = vector.shape_cast %53 : vector<1x1x128xf32> to vector<1x128xf32>
      %55 = vector.shape_cast %52 : vector<1x128xf32> to vector<1x1x128xf32>
      tpu.vector_store %arg23[%c0_34, %c9, %c0_35], %55 {strides = array<i32>} : memref<1x16x128xf32, #tpu.memory_space<vmem>>, vector<1x1x128xf32>,
      %cst_36 = arith.constant dense<0.000000e+00> : vector<2x64xf32>
      %56 = tpu.matmul %47, %12, %cst_36 {dimension_numbers = #tpu.dot_dimension_numbers<[1], [0], [0], [1], [0, 0, 1, 1], [], []>} : vector<2x128xf32>, vector<128x64xf32>, vector<2x64xf32> -> vector<2x64xf32>
      %57 = vector.extract_strided_slice %11 {offsets = [2, 0], sizes = [1, 64], strides = [1, 1]} : vector<16x64xf32> to vector<1x64xf32>
      %58 = vector.extract_strided_slice %11 {offsets = [10, 0], sizes = [1, 64], strides = [1, 1]} : vector<16x64xf32> to vector<1x64xf32>
      %59 = tpu.concatenate %57, %58 in 0 : vector<1x64xf32>, vector<1x64xf32> -> vector<2x64xf32>
      %60 = arith.addf %56, %59 : vector<2x64xf32>
      %cst_37 = arith.constant 0.000000e+00 : f32
      %61 = vector.broadcast %cst_37 : f32 to vector<2x64xf32>
      %62 = arith.maximumf %60, %61 : vector<2x64xf32>
      %cst_38 = arith.constant dense<0.000000e+00> : vector<2x128xf32>
      %63 = tpu.matmul %62, %13, %cst_38 {dimension_numbers = #tpu.dot_dimension_numbers<[1], [0], [0], [1], [0, 0, 1, 1], [], []>} : vector<2x64xf32>, vector<64x128xf32>, vector<2x128xf32> -> vector<2x128xf32>
      %64 = vector.broadcast %14 : vector<1x128xf32> to vector<2x128xf32>
      %65 = arith.addf %63, %64 : vector<2x128xf32>
      %66 = vector.extract_strided_slice %65 {offsets = [0, 0], sizes = [1, 128], strides = [1, 1]} : vector<2x128xf32> to vector<1x128xf32>
      %c0_39 = arith.constant 0 : index
      %c2 = arith.constant 2 : index
      %c0_40 = arith.constant 0 : index
      %67 = vector.load %arg23[%c0_39, %c2, %c0_40] : memref<1x16x128xf32, #tpu.memory_space<vmem>>, vector<1x1x128xf32>
      %68 = vector.shape_cast %67 : vector<1x1x128xf32> to vector<1x128xf32>
      %69 = vector.shape_cast %66 : vector<1x128xf32> to vector<1x1x128xf32>
      tpu.vector_store %arg23[%c0_39, %c2, %c0_40], %69 {strides = array<i32>} : memref<1x16x128xf32, #tpu.memory_space<vmem>>, vector<1x1x128xf32>,
      %70 = vector.extract_strided_slice %65 {offsets = [1, 0], sizes = [1, 128], strides = [1, 1]} : vector<2x128xf32> to vector<1x128xf32>
      %c0_41 = arith.constant 0 : index
      %c10 = arith.constant 10 : index
      %c0_42 = arith.constant 0 : index
      %71 = vector.load %arg23[%c0_41, %c10, %c0_42] : memref<1x16x128xf32, #tpu.memory_space<vmem>>, vector<1x1x128xf32>
      %72 = vector.shape_cast %71 : vector<1x1x128xf32> to vector<1x128xf32>
      %73 = vector.shape_cast %70 : vector<1x128xf32> to vector<1x1x128xf32>
      tpu.vector_store %arg23[%c0_41, %c10, %c0_42], %73 {strides = array<i32>} : memref<1x16x128xf32, #tpu.memory_space<vmem>>, vector<1x1x128xf32>,
      %cst_43 = arith.constant dense<0.000000e+00> : vector<2x64xf32>
      %74 = tpu.matmul %65, %12, %cst_43 {dimension_numbers = #tpu.dot_dimension_numbers<[1], [0], [0], [1], [0, 0, 1, 1], [], []>} : vector<2x128xf32>, vector<128x64xf32>, vector<2x64xf32> -> vector<2x64xf32>
      %75 = vector.extract_strided_slice %11 {offsets = [3, 0], sizes = [1, 64], strides = [1, 1]} : vector<16x64xf32> to vector<1x64xf32>
      %76 = vector.extract_strided_slice %11 {offsets = [11, 0], sizes = [1, 64], strides = [1, 1]} : vector<16x64xf32> to vector<1x64xf32>
      %77 = tpu.concatenate %75, %76 in 0 : vector<1x64xf32>, vector<1x64xf32> -> vector<2x64xf32>
      %78 = arith.addf %74, %77 : vector<2x64xf32>
      %cst_44 = arith.constant 0.000000e+00 : f32
      %79 = vector.broadcast %cst_44 : f32 to vector<2x64xf32>
      %80 = arith.maximumf %78, %79 : vector<2x64xf32>
      %cst_45 = arith.constant dense<0.000000e+00> : vector<2x128xf32>
      %81 = tpu.matmul %80, %13, %cst_45 {dimension_numbers = #tpu.dot_dimension_numbers<[1], [0], [0], [1], [0, 0, 1, 1], [], []>} : vector<2x64xf32>, vector<64x128xf32>, vector<2x128xf32> -> vector<2x128xf32>
      %82 = vector.broadcast %14 : vector<1x128xf32> to vector<2x128xf32>
      %83 = arith.addf %81, %82 : vector<2x128xf32>
      %84 = vector.extract_strided_slice %83 {offsets = [0, 0], sizes = [1, 128], strides = [1, 1]} : vector<2x128xf32> to vector<1x128xf32>
      %c0_46 = arith.constant 0 : index
      %c3 = arith.constant 3 : index
      %c0_47 = arith.constant 0 : index
      %85 = vector.load %arg23[%c0_46, %c3, %c0_47] : memref<1x16x128xf32, #tpu.memory_space<vmem>>, vector<1x1x128xf32>
      %86 = vector.shape_cast %85 : vector<1x1x128xf32> to vector<1x128xf32>
      %87 = vector.shape_cast %84 : vector<1x128xf32> to vector<1x1x128xf32>
      tpu.vector_store %arg23[%c0_46, %c3, %c0_47], %87 {strides = array<i32>} : memref<1x16x128xf32, #tpu.memory_space<vmem>>, vector<1x1x128xf32>,
      %88 = vector.extract_strided_slice %83 {offsets = [1, 0], sizes = [1, 128], strides = [1, 1]} : vector<2x128xf32> to vector<1x128xf32>
      %c0_48 = arith.constant 0 : index
      %c11 = arith.constant 11 : index
      %c0_49 = arith.constant 0 : index
      %89 = vector.load %arg23[%c0_48, %c11, %c0_49] : memref<1x16x128xf32, #tpu.memory_space<vmem>>, vector<1x1x128xf32>
      %90 = vector.shape_cast %89 : vector<1x1x128xf32> to vector<1x128xf32>
      %91 = vector.shape_cast %88 : vector<1x128xf32> to vector<1x1x128xf32>
      tpu.vector_store %arg23[%c0_48, %c11, %c0_49], %91 {strides = array<i32>} : memref<1x16x128xf32, #tpu.memory_space<vmem>>, vector<1x1x128xf32>,
      %cst_50 = arith.constant dense<0.000000e+00> : vector<2x64xf32>
      %92 = tpu.matmul %83, %12, %cst_50 {dimension_numbers = #tpu.dot_dimension_numbers<[1], [0], [0], [1], [0, 0, 1, 1], [], []>} : vector<2x128xf32>, vector<128x64xf32>, vector<2x64xf32> -> vector<2x64xf32>
      %93 = vector.extract_strided_slice %11 {offsets = [4, 0], sizes = [1, 64], strides = [1, 1]} : vector<16x64xf32> to vector<1x64xf32>
      %94 = vector.extract_strided_slice %11 {offsets = [12, 0], sizes = [1, 64], strides = [1, 1]} : vector<16x64xf32> to vector<1x64xf32>
      %95 = tpu.concatenate %93, %94 in 0 : vector<1x64xf32>, vector<1x64xf32> -> vector<2x64xf32>
      %96 = arith.addf %92, %95 : vector<2x64xf32>
      %cst_51 = arith.constant 0.000000e+00 : f32
      %97 = vector.broadcast %cst_51 : f32 to vector<2x64xf32>
      %98 = arith.maximumf %96, %97 : vector<2x64xf32>
      %cst_52 = arith.constant dense<0.000000e+00> : vector<2x128xf32>
      %99 = tpu.matmul %98, %13, %cst_52 {dimension_numbers = #tpu.dot_dimension_numbers<[1], [0], [0], [1], [0, 0, 1, 1], [], []>} : vector<2x64xf32>, vector<64x128xf32>, vector<2x128xf32> -> vector<2x128xf32>
      %100 = vector.broadcast %14 : vector<1x128xf32> to vector<2x128xf32>
      %101 = arith.addf %99, %100 : vector<2x128xf32>
      %102 = vector.extract_strided_slice %101 {offsets = [0, 0], sizes = [1, 128], strides = [1, 1]} : vector<2x128xf32> to vector<1x128xf32>
      %c0_53 = arith.constant 0 : index
      %c4 = arith.constant 4 : index
      %c0_54 = arith.constant 0 : index
      %103 = vector.load %arg23[%c0_53, %c4, %c0_54] : memref<1x16x128xf32, #tpu.memory_space<vmem>>, vector<1x1x128xf32>
      %104 = vector.shape_cast %103 : vector<1x1x128xf32> to vector<1x128xf32>
      %105 = vector.shape_cast %102 : vector<1x128xf32> to vector<1x1x128xf32>
      tpu.vector_store %arg23[%c0_53, %c4, %c0_54], %105 {strides = array<i32>} : memref<1x16x128xf32, #tpu.memory_space<vmem>>, vector<1x1x128xf32>,
      %106 = vector.extract_strided_slice %101 {offsets = [1, 0], sizes = [1, 128], strides = [1, 1]} : vector<2x128xf32> to vector<1x128xf32>
      %c0_55 = arith.constant 0 : index
      %c12 = arith.constant 12 : index
      %c0_56 = arith.constant 0 : index
      %107 = vector.load %arg23[%c0_55, %c12, %c0_56] : memref<1x16x128xf32, #tpu.memory_space<vmem>>, vector<1x1x128xf32>
      %108 = vector.shape_cast %107 : vector<1x1x128xf32> to vector<1x128xf32>
      %109 = vector.shape_cast %106 : vector<1x128xf32> to vector<1x1x128xf32>
      tpu.vector_store %arg23[%c0_55, %c12, %c0_56], %109 {strides = array<i32>} : memref<1x16x128xf32, #tpu.memory_space<vmem>>, vector<1x1x128xf32>,
      %cst_57 = arith.constant dense<0.000000e+00> : vector<2x64xf32>
      %110 = tpu.matmul %101, %12, %cst_57 {dimension_numbers = #tpu.dot_dimension_numbers<[1], [0], [0], [1], [0, 0, 1, 1], [], []>} : vector<2x128xf32>, vector<128x64xf32>, vector<2x64xf32> -> vector<2x64xf32>
      %111 = vector.extract_strided_slice %11 {offsets = [5, 0], sizes = [1, 64], strides = [1, 1]} : vector<16x64xf32> to vector<1x64xf32>
      %112 = vector.extract_strided_slice %11 {offsets = [13, 0], sizes = [1, 64], strides = [1, 1]} : vector<16x64xf32> to vector<1x64xf32>
      %113 = tpu.concatenate %111, %112 in 0 : vector<1x64xf32>, vector<1x64xf32> -> vector<2x64xf32>
      %114 = arith.addf %110, %113 : vector<2x64xf32>
      %cst_58 = arith.constant 0.000000e+00 : f32
      %115 = vector.broadcast %cst_58 : f32 to vector<2x64xf32>
      %116 = arith.maximumf %114, %115 : vector<2x64xf32>
      %cst_59 = arith.constant dense<0.000000e+00> : vector<2x128xf32>
      %117 = tpu.matmul %116, %13, %cst_59 {dimension_numbers = #tpu.dot_dimension_numbers<[1], [0], [0], [1], [0, 0, 1, 1], [], []>} : vector<2x64xf32>, vector<64x128xf32>, vector<2x128xf32> -> vector<2x128xf32>
      %118 = vector.broadcast %14 : vector<1x128xf32> to vector<2x128xf32>
      %119 = arith.addf %117, %118 : vector<2x128xf32>
      %120 = vector.extract_strided_slice %119 {offsets = [0, 0], sizes = [1, 128], strides = [1, 1]} : vector<2x128xf32> to vector<1x128xf32>
      %c0_60 = arith.constant 0 : index
      %c5 = arith.constant 5 : index
      %c0_61 = arith.constant 0 : index
      %121 = vector.load %arg23[%c0_60, %c5, %c0_61] : memref<1x16x128xf32, #tpu.memory_space<vmem>>, vector<1x1x128xf32>
      %122 = vector.shape_cast %121 : vector<1x1x128xf32> to vector<1x128xf32>
      %123 = vector.shape_cast %120 : vector<1x128xf32> to vector<1x1x128xf32>
      tpu.vector_store %arg23[%c0_60, %c5, %c0_61], %123 {strides = array<i32>} : memref<1x16x128xf32, #tpu.memory_space<vmem>>, vector<1x1x128xf32>,
      %124 = vector.extract_strided_slice %119 {offsets = [1, 0], sizes = [1, 128], strides = [1, 1]} : vector<2x128xf32> to vector<1x128xf32>
      %c0_62 = arith.constant 0 : index
      %c13 = arith.constant 13 : index
      %c0_63 = arith.constant 0 : index
      %125 = vector.load %arg23[%c0_62, %c13, %c0_63] : memref<1x16x128xf32, #tpu.memory_space<vmem>>, vector<1x1x128xf32>
      %126 = vector.shape_cast %125 : vector<1x1x128xf32> to vector<1x128xf32>
      %127 = vector.shape_cast %124 : vector<1x128xf32> to vector<1x1x128xf32>
      tpu.vector_store %arg23[%c0_62, %c13, %c0_63], %127 {strides = array<i32>} : memref<1x16x128xf32, #tpu.memory_space<vmem>>, vector<1x1x128xf32>,
      %cst_64 = arith.constant dense<0.000000e+00> : vector<2x64xf32>
      %128 = tpu.matmul %119, %12, %cst_64 {dimension_numbers = #tpu.dot_dimension_numbers<[1], [0], [0], [1], [0, 0, 1, 1], [], []>} : vector<2x128xf32>, vector<128x64xf32>, vector<2x64xf32> -> vector<2x64xf32>
      %129 = vector.extract_strided_slice %11 {offsets = [6, 0], sizes = [1, 64], strides = [1, 1]} : vector<16x64xf32> to vector<1x64xf32>
      %130 = vector.extract_strided_slice %11 {offsets = [14, 0], sizes = [1, 64], strides = [1, 1]} : vector<16x64xf32> to vector<1x64xf32>
      %131 = tpu.concatenate %129, %130 in 0 : vector<1x64xf32>, vector<1x64xf32> -> vector<2x64xf32>
      %132 = arith.addf %128, %131 : vector<2x64xf32>
      %cst_65 = arith.constant 0.000000e+00 : f32
      %133 = vector.broadcast %cst_65 : f32 to vector<2x64xf32>
      %134 = arith.maximumf %132, %133 : vector<2x64xf32>
      %cst_66 = arith.constant dense<0.000000e+00> : vector<2x128xf32>
      %135 = tpu.matmul %134, %13, %cst_66 {dimension_numbers = #tpu.dot_dimension_numbers<[1], [0], [0], [1], [0, 0, 1, 1], [], []>} : vector<2x64xf32>, vector<64x128xf32>, vector<2x128xf32> -> vector<2x128xf32>
      %136 = vector.broadcast %14 : vector<1x128xf32> to vector<2x128xf32>
      %137 = arith.addf %135, %136 : vector<2x128xf32>
      %138 = vector.extract_strided_slice %137 {offsets = [0, 0], sizes = [1, 128], strides = [1, 1]} : vector<2x128xf32> to vector<1x128xf32>
      %c0_67 = arith.constant 0 : index
      %c6 = arith.constant 6 : index
      %c0_68 = arith.constant 0 : index
      %139 = vector.load %arg23[%c0_67, %c6, %c0_68] : memref<1x16x128xf32, #tpu.memory_space<vmem>>, vector<1x1x128xf32>
      %140 = vector.shape_cast %139 : vector<1x1x128xf32> to vector<1x128xf32>
      %141 = vector.shape_cast %138 : vector<1x128xf32> to vector<1x1x128xf32>
      tpu.vector_store %arg23[%c0_67, %c6, %c0_68], %141 {strides = array<i32>} : memref<1x16x128xf32, #tpu.memory_space<vmem>>, vector<1x1x128xf32>,
      %142 = vector.extract_strided_slice %137 {offsets = [1, 0], sizes = [1, 128], strides = [1, 1]} : vector<2x128xf32> to vector<1x128xf32>
      %c0_69 = arith.constant 0 : index
      %c14 = arith.constant 14 : index
      %c0_70 = arith.constant 0 : index
      %143 = vector.load %arg23[%c0_69, %c14, %c0_70] : memref<1x16x128xf32, #tpu.memory_space<vmem>>, vector<1x1x128xf32>
      %144 = vector.shape_cast %143 : vector<1x1x128xf32> to vector<1x128xf32>
      %145 = vector.shape_cast %142 : vector<1x128xf32> to vector<1x1x128xf32>
      tpu.vector_store %arg23[%c0_69, %c14, %c0_70], %145 {strides = array<i32>} : memref<1x16x128xf32, #tpu.memory_space<vmem>>, vector<1x1x128xf32>,
      %cst_71 = arith.constant dense<0.000000e+00> : vector<2x64xf32>
      %146 = tpu.matmul %137, %12, %cst_71 {dimension_numbers = #tpu.dot_dimension_numbers<[1], [0], [0], [1], [0, 0, 1, 1], [], []>} : vector<2x128xf32>, vector<128x64xf32>, vector<2x64xf32> -> vector<2x64xf32>
      %147 = vector.extract_strided_slice %11 {offsets = [7, 0], sizes = [1, 64], strides = [1, 1]} : vector<16x64xf32> to vector<1x64xf32>
      %148 = vector.extract_strided_slice %11 {offsets = [15, 0], sizes = [1, 64], strides = [1, 1]} : vector<16x64xf32> to vector<1x64xf32>
      %149 = tpu.concatenate %147, %148 in 0 : vector<1x64xf32>, vector<1x64xf32> -> vector<2x64xf32>
      %150 = arith.addf %146, %149 : vector<2x64xf32>
      %cst_72 = arith.constant 0.000000e+00 : f32
      %151 = vector.broadcast %cst_72 : f32 to vector<2x64xf32>
      %152 = arith.maximumf %150, %151 : vector<2x64xf32>
      %cst_73 = arith.constant dense<0.000000e+00> : vector<2x128xf32>
      %153 = tpu.matmul %152, %13, %cst_73 {dimension_numbers = #tpu.dot_dimension_numbers<[1], [0], [0], [1], [0, 0, 1, 1], [], []>} : vector<2x64xf32>, vector<64x128xf32>, vector<2x128xf32> -> vector<2x128xf32>
      %154 = vector.broadcast %14 : vector<1x128xf32> to vector<2x128xf32>
      %155 = arith.addf %153, %154 : vector<2x128xf32>
      %156 = vector.extract_strided_slice %155 {offsets = [0, 0], sizes = [1, 128], strides = [1, 1]} : vector<2x128xf32> to vector<1x128xf32>
      %c0_74 = arith.constant 0 : index
      %c7 = arith.constant 7 : index
      %c0_75 = arith.constant 0 : index
      %157 = vector.load %arg23[%c0_74, %c7, %c0_75] : memref<1x16x128xf32, #tpu.memory_space<vmem>>, vector<1x1x128xf32>
      %158 = vector.shape_cast %157 : vector<1x1x128xf32> to vector<1x128xf32>
      %159 = vector.shape_cast %156 : vector<1x128xf32> to vector<1x1x128xf32>
      tpu.vector_store %arg23[%c0_74, %c7, %c0_75], %159 {strides = array<i32>} : memref<1x16x128xf32, #tpu.memory_space<vmem>>, vector<1x1x128xf32>,
      %160 = vector.extract_strided_slice %155 {offsets = [1, 0], sizes = [1, 128], strides = [1, 1]} : vector<2x128xf32> to vector<1x128xf32>
      %c0_76 = arith.constant 0 : index
      %c15 = arith.constant 15 : index
      %c0_77 = arith.constant 0 : index
      %161 = vector.load %arg23[%c0_76, %c15, %c0_77] : memref<1x16x128xf32, #tpu.memory_space<vmem>>, vector<1x1x128xf32>
      %162 = vector.shape_cast %161 : vector<1x1x128xf32> to vector<1x128xf32>
      %163 = vector.shape_cast %160 : vector<1x128xf32> to vector<1x1x128xf32>
      tpu.vector_store %arg23[%c0_76, %c15, %c0_77], %163 {strides = array<i32>} : memref<1x16x128xf32, #tpu.memory_space<vmem>>, vector<1x1x128xf32>,
    } else {
    }
    return
  }
  func.func @transform_0(%arg0: i32) -> (i32, i32) {
    %c0_i32 = arith.constant 0 : i32
    %c0_i32_0 = arith.constant 0 : i32
    return %arg0, %c0_i32 : i32, i32
  }
  func.func @transform_1(%arg0: i32) -> (i32, i32) {
    %c0_i32 = arith.constant 0 : i32
    %c0_i32_0 = arith.constant 0 : i32
    %c0_i32_1 = arith.constant 0 : i32
    return %c0_i32, %c0_i32_0 : i32, i32
  }
  func.func @transform_2(%arg0: i32) -> (i32, i32) {
    %c0_i32 = arith.constant 0 : i32
    %c0_i32_0 = arith.constant 0 : i32
    %c0_i32_1 = arith.constant 0 : i32
    return %c0_i32, %c0_i32_0 : i32, i32
  }
  func.func @transform_3(%arg0: i32) -> (i32, i32) {
    %c0_i32 = arith.constant 0 : i32
    %c0_i32_0 = arith.constant 0 : i32
    %c0_i32_1 = arith.constant 0 : i32
    return %c0_i32, %c0_i32_0 : i32, i32
  }
  func.func @transform_4(%arg0: i32) -> (i32, i32) {
    %c0_i32 = arith.constant 0 : i32
    %c0_i32_0 = arith.constant 0 : i32
    %c0_i32_1 = arith.constant 0 : i32
    return %c0_i32, %c0_i32_0 : i32, i32
  }
  func.func @transform_5(%arg0: i32) -> (i32, i32) {
    %c0_i32 = arith.constant 0 : i32
    %c0_i32_0 = arith.constant 0 : i32
    %c0_i32_1 = arith.constant 0 : i32
    return %c0_i32, %c0_i32_0 : i32, i32
  }
  func.func @transform_6(%arg0: i32) -> (i32, i32) {
    %c0_i32 = arith.constant 0 : i32
    %c0_i32_0 = arith.constant 0 : i32
    %c0_i32_1 = arith.constant 0 : i32
    return %c0_i32, %c0_i32_0 : i32, i32
  }
  func.func @transform_7(%arg0: i32) -> (i32, i32) {
    %c0_i32 = arith.constant 0 : i32
    %c0_i32_0 = arith.constant 0 : i32
    %c0_i32_1 = arith.constant 0 : i32
    return %c0_i32, %c0_i32_0 : i32, i32
  }
  func.func @transform_8(%arg0: i32) -> (i32, i32) {
    %c0_i32 = arith.constant 0 : i32
    %c0_i32_0 = arith.constant 0 : i32
    %c0_i32_1 = arith.constant 0 : i32
    return %c0_i32, %c0_i32_0 : i32, i32
  }
  func.func @transform_9(%arg0: i32) -> (i32, i32) {
    %c0_i32 = arith.constant 0 : i32
    %c0_i32_0 = arith.constant 0 : i32
    %c0_i32_1 = arith.constant 0 : i32
    return %c0_i32, %c0_i32_0 : i32, i32
  }
  func.func @transform_10(%arg0: i32) -> (i32, i32) {
    %c0_i32 = arith.constant 0 : i32
    %c0_i32_0 = arith.constant 0 : i32
    %c0_i32_1 = arith.constant 0 : i32
    return %c0_i32, %c0_i32_0 : i32, i32
  }
  func.func @transform_11(%arg0: i32) -> (i32, i32) {
    %c0_i32 = arith.constant 0 : i32
    %c0_i32_0 = arith.constant 0 : i32
    %c0_i32_1 = arith.constant 0 : i32
    return %c0_i32, %c0_i32_0 : i32, i32
  }
  func.func @transform_12(%arg0: i32) -> (i32, i32) {
    %c0_i32 = arith.constant 0 : i32
    %c0_i32_0 = arith.constant 0 : i32
    %c0_i32_1 = arith.constant 0 : i32
    return %c0_i32, %c0_i32_0 : i32, i32
  }
  func.func @transform_13(%arg0: i32) -> (i32, i32) {
    %c0_i32 = arith.constant 0 : i32
    %c0_i32_0 = arith.constant 0 : i32
    %c0_i32_1 = arith.constant 0 : i32
    return %c0_i32, %c0_i32_0 : i32, i32
  }
  func.func @transform_14(%arg0: i32) -> (i32, i32) {
    %c0_i32 = arith.constant 0 : i32
    %c0_i32_0 = arith.constant 0 : i32
    %c0_i32_1 = arith.constant 0 : i32
    return %c0_i32, %c0_i32_0 : i32, i32
  }
  func.func @transform_15(%arg0: i32) -> (i32, i32) {
    %c0_i32 = arith.constant 0 : i32
    %c0_i32_0 = arith.constant 0 : i32
    %c0_i32_1 = arith.constant 0 : i32
    return %c0_i32, %c0_i32_0 : i32, i32
  }
  func.func @transform_16(%arg0: i32) -> (i32, i32) {
    %c0_i32 = arith.constant 0 : i32
    %c0_i32_0 = arith.constant 0 : i32
    %c0_i32_1 = arith.constant 0 : i32
    return %c0_i32, %c0_i32_0 : i32, i32
  }
  func.func @transform_17(%arg0: i32) -> (i32, i32) {
    %c0_i32 = arith.constant 0 : i32
    %c0_i32_0 = arith.constant 0 : i32
    %c0_i32_1 = arith.constant 0 : i32
    return %c0_i32, %c0_i32_0 : i32, i32
  }
  func.func @transform_18(%arg0: i32) -> (i32, i32) {
    %c0_i32 = arith.constant 0 : i32
    %c0_i32_0 = arith.constant 0 : i32
    %c0_i32_1 = arith.constant 0 : i32
    return %c0_i32, %c0_i32_0 : i32, i32
  }
  func.func @transform_19(%arg0: i32) -> (i32, i32) {
    %c0_i32 = arith.constant 0 : i32
    %c0_i32_0 = arith.constant 0 : i32
    %c0_i32_1 = arith.constant 0 : i32
    return %c0_i32, %c0_i32_0 : i32, i32
  }
  func.func @transform_20(%arg0: i32) -> (i32, i32) {
    %c0_i32 = arith.constant 0 : i32
    %c0_i32_0 = arith.constant 0 : i32
    %c0_i32_1 = arith.constant 0 : i32
    return %c0_i32, %c0_i32_0 : i32, i32
  }
  func.func @transform_21(%arg0: i32) -> (i32, i32) {
    %c0_i32 = arith.constant 0 : i32
    %c0_i32_0 = arith.constant 0 : i32
    return %arg0, %c0_i32 : i32, i32
  }
  func.func @transform_22(%arg0: i32) -> (i32, i32, i32) {
    %c1_i32 = arith.constant 1 : i32
    %0 = arith.cmpi eq, %arg0, %c1_i32 : i32
    %c0_i32 = arith.constant 0 : i32
    %c1_i32_0 = arith.constant 1 : i32
    %1 = arith.select %0, %c0_i32, %c1_i32_0 : i32
    %c0_i32_1 = arith.constant 0 : i32
    %c0_i32_2 = arith.constant 0 : i32
    %c0_i32_3 = arith.constant 0 : i32
    return %1, %c0_i32_1, %c0_i32_2 : i32, i32, i32
  }
}

</mosaic_0001>

<bundles_post_ra>
// kernel: markov_vae_ctc_forward.1
= control target key start
LH: loop header
LB: loop body
LE: loop exit
PB: predicated region body
PF: predicated region fallthrough
CT: control target
= control target key end

     0   :  { %s4462_s0 = inlined_call_operand.vmem [shape: f32[32,16], index: 0, kind: input, shape index: {}]   ;;  %s4463_s1 = inlined_call_operand.vmem [shape: f32[16,16], index: 1, kind: input, shape index: {}]   ;;  %s4464_s2 = inlined_call_operand.vmem [shape: f32[1,32], index: 2, kind: input, shape index: {}]   ;;  %s4465_s3 = inlined_call_operand.vmem [shape: f32[16,96], index: 3, kind: input, shape index: {}]   ;;  %s4466_s4 = inlined_call_operand.vmem [shape: f32[1,96], index: 4, kind: input, shape index: {}]   ;;  %s4467_s5 = inlined_call_operand.vmem [shape: f32[64,64], index: 5, kind: input, shape index: {}]   ;;  %s4468_s6 = inlined_call_operand.vmem [shape: f32[1,64], index: 6, kind: input, shape index: {}]   ;;  %s4469_s7 = inlined_call_operand.vmem [shape: f32[32,32], index: 7, kind: input, shape index: {}]   ;;  %s4470_s8 = inlined_call_operand.vmem [shape: f32[1,32], index: 8, kind: input, shape index: {}]   ;;  %s4471_s9 = inlined_call_operand.vmem [shape: f32[32,32], index: 9, kind: input, shape index: {}]   ;;  %s4472_s10 = inlined_call_operand.vmem [shape: f32[32,64], index: 10, kind: input, shape index: {}]   ;;  %s4473_s11 = inlined_call_operand.vmem [shape: f32[1,64], index: 11, kind: input, shape index: {}]   ;;  %s4474_s12 = inlined_call_operand.vmem [shape: f32[16,64], index: 12, kind: input, shape index: {}]   ;;  %s4475_s13 = inlined_call_operand.vmem [shape: f32[1,64], index: 13, kind: input, shape index: {}]   ;;  %s4476_s14 = inlined_call_operand.vmem [shape: f32[64,128], index: 14, kind: input, shape index: {}]   ;;  %s4477_s15 = inlined_call_operand.vmem [shape: f32[1,128], index: 15, kind: input, shape index: {}]   ;;  %s4478_s16 = inlined_call_operand.vmem [shape: f32[128,64], index: 16, kind: input, shape index: {}]   ;;  %s4479_s17 = inlined_call_operand.vmem [shape: f32[16,64], index: 17, kind: input, shape index: {}]   ;;  %s4480_s18 = inlined_call_operand.vmem [shape: f32[1,64], index: 18, kind: input, shape index: {}]   ;;  %s4481_s19 = inlined_call_operand.vmem [shape: f32[64,128], index: 19, kind: input, shape index: {}]   ;;  %s4482_s20 = inlined_call_operand.vmem [shape: f32[1,128], index: 20, kind: input, shape index: {}]   ;;  %s4483_s21 = inlined_call_operand.vmem [shape: f32[32,128], index: 21, kind: output, shape index: {0}]   ;;  %s4484_s22 = inlined_call_operand.vmem [shape: f32[2,16,128], index: 22, kind: output, shape index: {1}]  }
   0x1   :  { %4489 = sst [smem:[#allocation3_spill]] %s4462_s0 }
   0x2   :  { %4490 = sst [smem:[#allocation4_spill]] %s4463_s1 }
   0x3   :  { %4491 = sst [smem:[#allocation5_spill]] %s4464_s2 }
   0x4   :  { %4492 = sst [smem:[#allocation6_spill]] %s4465_s3  ;;  %s3899_s3 = smov 0  }
   0x5   :  { %4493 = sst [smem:[#allocation7_spill]] %s4466_s4 }
   0x6   :  { %4494 = sst [smem:[#allocation8_spill]] %s4467_s5 }
   0x7   :  { %4495 = sst [smem:[#allocation9_spill]] %s4468_s6 }
   0x8   :  { %4496 = sst [smem:[#allocation10_spill]] %s4477_s15 }
   0x9   :  { %4497 = sst [smem:[#allocation11_spill]] %s4482_s20 }
   0xa LB: > { %4498 = sst [smem:[#allocation2_spill]] %s3776_s3  ;;  %s3905_s28 = sadd.s32 4294967295, %s3776_s3   ;;  %s3776_s3 = sphi %s3899_s3, %s33_s3  }
   0xb   : > { %p2695_p0 = scmp.ge.s32.totalorder %s3776_s3, 1  ;;  %p620_p1 = scmp.lt.s32.totalorder %s3776_s3, 3 }
   0xd   : > { %p621_p2 = pnand %p2695_p0, %p620_p1 }
   0xe   : > { %s2696_s29 = sshll.u32 (!%p621_p2), %s3905_s28, 1  ;;  %p701_p3 = scmp.ne.s32.totalorder (!%p621_p2), %s3905_s28, 1 }
   0xf   : > { %624 = sbr.rel (%p621_p2) target bundleno = 5056 (0x13c0), region = 104  ;;  %p690_p4 = scmp.lt.s32.totalorder (!%p621_p2), %s2696_s29, 3 }
  0x10   : > { %s4499_s1 = sld [smem:[#allocation3_spill]] (!%p621_p2)  ;;  %p2702_p6 = scmp.ge.s32.totalorder (!%p621_p2), %s3905_s28, 1 }
  0x16   : > { %s702_s30 = scalar_select %p701_p3, 1, 0 }
  0x17   : > { %s4510_s29 = smov (!%p690_p4, %s2696_s29), 3  ;;  %713 = sbr.rel (%p2702_p6) target bundleno = 1605 (0x645), region = 108 }
  0x18   : > { %p703_p5 = scmp.lt.s32.totalorder %s702_s30, 1  ;;  %s2697_s4 = sshll.u32 %s4510_s29, 3  ;;  %vm725_vm0 = vcmask (!%p2702_p6), 130048   ;;  %vm824_vm1 = vcmask (!%p2702_p6), 523264   ;;  %v933_v25 = vld [vmem:[%s4469_s7] sm:$0xff] (!%p2702_p6)  ;;  %v934_v26 = vld [vmem:[%s4469_s7 + $0x8] sm:$0xff] (!%p2702_p6) }
  0x19   : > { %s693_s5 = scalar_lea.vmem %s4499_s1, %s2697_s4  ;;  %s3919_s25 = scalar_lea.vmem %s4483_s21, %s2697_s4  ;;  %v3457_v27 = vpack.c.bf16 (!%p2702_p6), %v934_v26, %v933_v25  ;;  %v935_v35 = vld [vmem:[%s4469_s7 + $0x10] sm:$0xff] (!%p2702_p6)  ;;  %v936_v36 = vld [vmem:[%s4469_s7 + $0x18] sm:$0xff] (!%p2702_p6)  ;;  %v1028_v40 = vld [vmem:[%s4471_s9] sm:$0xff] (!%p2702_p6)  ;;  %vm944_vm2 = vcmask (!%p2702_p6), 261120  }
  0x1a   : > { %s4512_s30 = smov (!%p703_p5, %s702_s30), 1  ;;  %s4500_s15 = sld [smem:[#allocation6_spill]] (!%p2702_p6)  ;;  %v714_v2 = vld [vmem:[%s693_s5] sm:$0xff] (!%p2702_p6)  ;;  %v715_v12 = vld [vmem:[%s693_s5 + $0x8] sm:$0xff] (!%p2702_p6)  ;;  %v3461_v38 = vpack.c.bf16 (!%p2702_p6), %v936_v36, %v935_v35  ;;  %v1030_v52 = vld [vmem:[%s4471_s9 + $0x10] sm:$0xff] (!%p2702_p6) }
  0x1b   : > { %s2736_s26 = sshll.u32 %s4512_s30, 4  ;;  %2971 = vmatprep.mubr.msk.f32.mxu0 (!%p2702_p6), %vm725_vm0, %v714_v2  ;;  %s4501_s1 = sld [smem:[#allocation8_spill]] (!%p2702_p6)  ;;  %v1029_v41 = vld [vmem:[%s4471_s9 + $0x8] sm:$0xff] (!%p2702_p6)  ;;  %v1031_v53 = vld [vmem:[%s4471_s9 + $0x18] sm:$0xff] (!%p2702_p6)  ;;  %v2710_v55 = vld [vmem:[%s4470_s8] ss:$0 sm:$0xff] (!%p2702_p6) }
  0x1c   : > { %s3924_s3 = scalar_lea.vmem %s4484_s22, %s2736_s26  ;;  %s4502_s2 = sld [smem:[#allocation5_spill]] (!%p2702_p6)  ;;  %v3465_v42 = vpack.c.bf16 (!%p2702_p6), %v1029_v41, %v1028_v40  ;;  %v3469_v54 = vpack.c.bf16 (!%p2702_p6), %v1031_v53, %v1030_v52  ;;  %v1125_v62 = vld [vmem:[%s4472_s10] sm:$0xff] (!%p2702_p6)  ;;  %v1126_v63 = vld [vmem:[%s4472_s10 + $0x8] sm:$0xff] (!%p2702_p6)  ;;  %v1128_v2 = vld [vmem:[%s4472_s10 + $0x18] sm:$0xff] (!%p2702_p6) }
  0x1d   : > { %s3778_s27 = smov (!%p2702_p6), 32   ;;  %s4503_s23 = sld [smem:[#allocation7_spill]] (!%p2702_p6) }
  0x1e   : > { %s4504_s26 = sld [smem:[#allocation9_spill]]  ;;  %s3779_s6 = smov 96  }
  0x20   : > { %v716_v0 = vld [vmem:[%s4500_s15] sm:$0xff]  ;;  %v717_v1 = vld [vmem:[%s4500_s15 + $0x8] sm:$0xff] }
  0x21   : > { %v3437_v3 = vpack.c.bf16 %v717_v1, %v716_v0  ;;  %v809_v4 = vld [vmem:[%s4501_s1] sm:$0xff]  ;;  %v810_v5 = vld [vmem:[%s4501_s1 + $0x8] sm:$0xff]  ;;  %v811_v7 = vld [vmem:[%s4501_s1 + $0x10] sm:$0xff]  ;;  %v3473_v1 = vpack.c.bf16 %v1126_v63, %v1125_v62 }
  0x22   : > { %v3441_v6 = vpack.c.bf16 %v810_v5, %v809_v4  ;;  %v812_v8 = vld [vmem:[%s4501_s1 + $0x18] sm:$0xff]  ;;  %v813_v10 = vld [vmem:[%s4501_s1 + $0x20] sm:$0xff]  ;;  %v814_v11 = vld [vmem:[%s4501_s1 + $0x28] sm:$0xff] }
  0x23   : > { %3438 = vmatprep.subr.bf16.mxu0 %v3437_v3  ;;  %v3445_v9 = vpack.c.bf16 %v812_v8, %v811_v7  ;;  %v3449_v13 = vpack.c.bf16 %v814_v11, %v813_v10  ;;  %v815_v14 = vld [vmem:[%s4501_s1 + $0x30] sm:$0xff]  ;;  %v816_v15 = vld [vmem:[%s4501_s1 + $0x38] sm:$0xff]  ;;  %v2709_v17 = vld [vmem:[%s4502_s2] ss:$0 sm:$0xff] }
  0x24   : > { %3440 = vmatpush3.bf16.msra.mxu0 %v3437_v3  ;;  %3442 = vmatprep.subr.bf16.mxu1 %v3441_v6  ;;  %v3453_v16 = vpack.c.bf16 %v816_v15, %v815_v14  ;;  %v2703_v18 = vld [vmem:[%s4503_s23] ss:$0 sm:$0xff]  ;;  %v1127_v0 = vld [vmem:[%s4472_s10 + $0x10] sm:$0xff] }
  0x25   : > { %3444 = vmatpush3.bf16.msra.mxu1 %v3441_v6  ;;  %918 = vrot.lane.b32.xlu0 %v2709_v17, %s3778_s27  ;;  %v2706_v28 = vld [vmem:[%s4504_s26] ss:$0 sm:$0xff]  ;;  %v3477_v3 = vpack.c.bf16 %v1128_v2, %v1127_v0  ;;  %s3780_s26 = smov 64  }
  0x26   : > { %3446 = vmatprep.subr.bf16.mxu1 %v3445_v9  ;;  %3458 = vmatprep.subr.bf16.mxu0 %v3457_v27  ;;  %v2715_v14 = vld [vmem:[%s4473_s11] ss:$0 sm:$0xff] }
  0x27   : > { %2972 = vmatmul.mubr.msk.f32.vlgmr.msra.gmra.mrb[0].mxu0 %vm725_vm0, %v715_v12 }
  0x28   : > { %3460 = vmatpush3.bf16.msra.mxu0 %v3457_v27 }
  0x29   : > { %3448 = vmatpush3.bf16.msra.mxu1 %v3445_v9  ;;  %3462 = vmatprep.subr.bf16.mxu0 %v3461_v38 }
  0x2a   : > { %3450 = vmatprep.subr.bf16.mxu1 %v3449_v13 }
  0x2c   : > { %3464 = vmatpush3.bf16.msra.mxu0 %v3461_v38 }
  0x2d   : > { %3452 = vmatpush3.bf16.msra.mxu1 %v3449_v13  ;;  %3466 = vmatprep.subr.bf16.mxu0 %v3465_v42 }
  0x2e   : > { %3454 = vmatprep.subr.bf16.mxu1 %v3453_v16 }
  0x31   : > { %3456 = vmatpush3.bf16.msra.mxu1 %v3453_v16 }
  0x32   : > { %3474 = vmatprep.subr.bf16.mxu1 %v3473_v1 }
  0x97   : > { %v919_v43 = vpop.permute.xlu0 %918 }
  0xfa   : > { %v2973_v19 = vpop.f32.mrb[0].mxu0 }
  0xfb   : > { %v3965_v20 = vadd.f32 %v2973_v19, %v2703_v18  ;;  %v798_v21 = vpop.f32.mrb[1].mxu0 }
  0xfc   : > { %v3967_v22 = vadd.f32 %v2703_v18, %v798_v21 }
  0xfd   : > { %v808_v24 = vmax.f32 %v3965_v20, 0.0 }
  0xfe   : > { %v807_v23 = vmax.f32 %v3967_v22, 0.0 }
 0x100   : > { %2990 = vmatprep.mubr.msk.f32.mxu1 %vm824_vm1, %v807_v23 }
 0x101   : > { %2991 = vmatmul.mubr.msk.f32.vlgmr.msra.gmra.mrb[0].mxu1 %vm824_vm1, %v808_v24 }
 0x102   : > { %3476 = vmatpush3.bf16.msra.mxu1 %v3473_v1 }
 0x103   : > { %3478 = vmatprep.subr.bf16.mxu1 %v3477_v3 }
 0x106   : > { %3480 = vmatpush3.bf16.msra.mxu1 %v3477_v3 }
 0x1d4   : > { %v2992_v29 = vpop.f32.mrb[0].mxu1 }
 0x1d5   : > { %v3982_v30 = vadd.f32 %v2992_v29, %v2706_v28  ;;  %v897_v31 = vpop.f32.mrb[1].mxu1 }
 0x1d6   : > { %v3984_v32 = vadd.f32 %v2706_v28, %v897_v31 }
 0x1d7   : > { %v907_v33 = vmul.f32 0.5, %v3982_v30 }
 0x1d8   : > { %v906_v34 = vmul.f32 0.5, %v3984_v32 }
 0x1d9   : > { %v910_v37 = vmul.f32 1.442695, %v907_v33 }
 0x1da   : > { %v908_v39 = vmul.f32 1.442695, %v906_v34 }
 0x1db   : > { %3766 = vpow2.f32 %v910_v37 }
 0x1dc   : > { %3768 = vpow2.f32 %v908_v39 }
 0x1e5   : > { %v3767_v44 = vpop.eup %3766 }
 0x1e6   : > { %v3769_v45 = vpop.eup %3768  ;;  %v922_v46 = vmul.f32 %v3767_v44, %v919_v43 }
 0x1e7   : > { %v921_v47 = vmul.f32 %v3769_v45, %v919_v43 }
 0x1e8   : > { %927 = vrot.lane.b32.xlu1 %v922_v46, %s3779_s6 }
 0x1e9   : > { %925 = vrot.lane.b32.xlu0 %v921_v47, %s3779_s6 }
 0x25a   : > { %v928_v48 = vpop.permute.xlu1 %927 }
 0x25b   : > { %v926_v49 = vpop.permute.xlu0 %925  ;;  %v932_v51 = vadd.f32 %v928_v48, %v3982_v30 }
 0x25c   : > { %v931_v50 = vadd.f32 %v926_v49, %v3984_v32 }
 0x25e   : > { %3001 = vmatprep.mubr.msk.f32.mxu0 %vm944_vm2, %v931_v50 }
 0x25f   : > { %3002 = vmatmul.mubr.msk.f32.vlgmr.msra.gmra.mrb[2].mxu0 %vm944_vm2, %v932_v51 }
 0x260   : > { %3468 = vmatpush3.bf16.msra.mxu0 %v3465_v42 }
 0x261   : > { %3470 = vmatprep.subr.bf16.mxu0 %v3469_v54 }
 0x264   : > { %3472 = vmatpush3.bf16.msra.mxu0 %v3469_v54 }
 0x332   : > { %v3003_v56 = vpop.f32.mrb[2].mxu0 }
 0x333   : > { %v1023_v57 = vadd.f32 %v3003_v56, %v2710_v55  ;;  %v1017_v58 = vpop.f32.mrb[3].mxu0 }
 0x334   : > { %v1018_v59 = vadd.f32 %v2710_v55, %v1017_v58 }
 0x335   : > { %v1027_v61 = vmax.f32 %v1023_v57, 0.0 }
 0x336   : > { %v1026_v60 = vmax.f32 %v1018_v59, 0.0 }
 0x338   : > { %3012 = vmatprep.mubr.msk.f32.mxu0 %vm944_vm2, %v1026_v60 }
 0x339   : > { %3013 = vmatmul.mubr.msk.f32.vlgmr.msra.gmra.mrb[4].mxu0 %vm944_vm2, %v1027_v61 }
 0x40c   : > { %v3014_v4 = vpop.f32.mrb[4].mxu0 }
 0x40d   : > { %1117 = vrot.lane.b32.xlu0 %v3014_v4, %s3780_s26  ;;  %v1104_v5 = vpop.f32.mrb[5].mxu0 }
 0x40e   : > { %1115 = vrot.lane.b32.xlu1 %v1104_v5, %s3780_s26 }
 0x47f   : > { %v1118_v6 = vpop.permute.xlu0 %1117 }
 0x480   : > { %v1122_v7 = vadd.f32 %v1118_v6, %v3965_v20  ;;  %v1116_v8 = vpop.permute.xlu1 %1115 }
 0x481   : > { %v1121_v9 = vadd.f32 %v1116_v8, %v3967_v22 }
 0x482   : > { %v1124_v10 = vmax.f32 %v1122_v7, 0.0 }
 0x483   : > { %v1123_v11 = vmax.f32 %v1121_v9, 0.0 }
 0x484   : > { %1140 = vrot.lane.b32.xlu0 %v1124_v10, %s3780_s26 }
 0x485   : > { %1138 = vrot.lane.b32.xlu1 %v1123_v11, %s3780_s26 }
 0x4f6   : > { %v1141_v13 = vpop.permute.xlu0 %1140 }
 0x4f7   : > { %v1139_v12 = vpop.permute.xlu1 %1138 }
 0x4f8   : > { %3023 = vmatprep.mubr.msk.f32.mxu1 %vm944_vm2, %v1139_v12 }
 0x4f9   : > { %3024 = vmatmul.mubr.msk.f32.vlgmr.msra.gmra.mrb[2].mxu1 %vm944_vm2, %v1141_v13 }
 0x5cc   : > { %v3025_v15 = vpop.f32.mrb[2].mxu1 }
 0x5cd   : > { %v1218_v16 = vadd.f32 %v3025_v15, %v2715_v14  ;;  %v1212_v17 = vpop.f32.mrb[3].mxu1 }
 0x5ce   : > { %v1213_v18 = vadd.f32 %v2715_v14, %v1212_v17 }
 0x5cf   : > { %1225 = vrot.lane.b32.xlu0 %v1218_v16, %s3780_s26 }
 0x5d0   : > { %1223 = vrot.lane.b32.xlu1 %v1213_v18, %s3780_s26 }
 0x641   : > { %v1226_v19 = vpop.permute.xlu0 %1225 }
 0x642   : > { %v1224_v20 = vpop.permute.xlu1 %1223  ;;  %v1230_v22 = vsel %vm824_vm1, %v3982_v30, %v1226_v19 }
 0x643   : > { %v1229_v21 = vsel %vm824_vm1, %v3984_v32, %v1224_v20  ;;  %1232 = vst [vmem:[%s3919_s25 + $0x8] sm:$0xff] %v1230_v22 }
 0x644   : > { %1231 = vst [vmem:[%s3919_s25] sm:$0xff] %v1229_v21 }
 0x645 PF: > { %1236 = sbr.rel (%p701_p3) target bundleno = 5056 (0x13c0), region = 112  ;;  %v1359_v23 = vld [vmem:[%s4474_s12] sm:$0xff] (!%p701_p3)  ;;  %v1360_v24 = vld [vmem:[%s4474_s12 + $0x8] sm:$0xff] (!%p701_p3)  ;;  %s4505_s6 = sld [smem:[#allocation4_spill]] (!%p701_p3)  ;;  %v3781_v26 = vmov (!%p701_p3), 0.0|0.0   ;;  %vm3782_vm3 = vmmov (!%p701_p3), 0  }
 0x646   : > { %3485 = vmatprep.subr.bf16.mxu1 (!%p701_p3), %v3781_v26  ;;  %v3486_v27 = vpack.c.bf16 (!%p701_p3), %v1360_v24, %v1359_v23  ;;  %v3783_v28 = vmov (!%p701_p3), 0.0   ;;  %vm1248_vm4 = vcmask (!%p701_p3), 130048   ;;  %vm1357_vm5 = vcmask (!%p701_p3), 1040384   ;;  %v1239_v30 = vld [vmem:[%s4479_s17] sm:$0xff] (!%p701_p3)  ;;  %v1240_v31 = vld [vmem:[%s4479_s17 + $0x8] sm:$0xff] (!%p701_p3)  ;;  %v1444_v38 = vld [vmem:[%s4476_s14 + $0x10] sm:$0xff] (!%p701_p3) }
 0x647   : > { %3037 = vmatprep.mubr.msk.f32.mxu1 (!%p701_p3), %vm3782_vm3, %v3783_v28  ;;  %v3481_v33 = vpack.c.bf16 (!%p701_p3), %v1240_v31, %v1239_v30  ;;  %v1442_v34 = vld [vmem:[%s4476_s14] sm:$0xff] (!%p701_p3)  ;;  %v1443_v35 = vld [vmem:[%s4476_s14 + $0x8] sm:$0xff] (!%p701_p3)  ;;  %v1445_v39 = vld [vmem:[%s4476_s14 + $0x18] sm:$0xff] (!%p701_p3)  ;;  %vm1457_vm6 = vcmask (!%p701_p3), 523264   ;;  %s4506_s29 = sld [smem:[#allocation10_spill]] (!%p701_p3)  ;;  %s4507_s25 = sld [smem:[#allocation11_spill]] (!%p701_p3) }
 0x648   : > { %3487 = vmatpush3.bf16.msra.mxu1 (!%p701_p3), %v3486_v27  ;;  %v3489_v37 = vpack.c.bf16 (!%p701_p3), %v1443_v35, %v1442_v34  ;;  %v3492_v40 = vpack.c.bf16 (!%p701_p3), %v1445_v39, %v1444_v38  ;;  %v1446_v41 = vld [vmem:[%s4476_s14 + $0x20] sm:$0xff] (!%p701_p3)  ;;  %v1447_v42 = vld [vmem:[%s4476_s14 + $0x28] sm:$0xff] (!%p701_p3)  ;;  %v1448_v44 = vld [vmem:[%s4476_s14 + $0x30] sm:$0xff] (!%p701_p3) }
 0x649   : > { %3482 = vmatprep.subr.bf16.mxu0 (!%p701_p3), %v3481_v33  ;;  %3500 = vmatprep.subr.bf16.mxu1 (!%p701_p3), %v3781_v26  ;;  %v3495_v43 = vpack.c.bf16 (!%p701_p3), %v1447_v42, %v1446_v41  ;;  %v1449_v45 = vld [vmem:[%s4476_s14 + $0x38] sm:$0xff] (!%p701_p3)  ;;  %v1330_v47 = vld [vmem:[%s4478_s16] sm:$0xff] (!%p701_p3)  ;;  %v1331_v48 = vld [vmem:[%s4478_s16 + $0x8] sm:$0xff] (!%p701_p3) }
 0x64a   : > { %3484 = vmatpush3.bf16.msra.mxu0 (!%p701_p3), %v3481_v33  ;;  %v3498_v46 = vpack.c.bf16 (!%p701_p3), %v1449_v45, %v1448_v44  ;;  %v1332_v49 = vld [vmem:[%s4478_s16 + $0x10] sm:$0xff] (!%p701_p3)  ;;  %v4110_v50 = vpack.c.bf16 (!%p701_p3), %v1331_v48, %v1330_v47  ;;  %v1333_v51 = vld [vmem:[%s4478_s16 + $0x18] sm:$0xff] (!%p701_p3)  ;;  %v1334_v53 = vld [vmem:[%s4478_s16 + $0x20] sm:$0xff] (!%p701_p3) }
 0x64b   : > { %v1237_v25 = vld [vmem:[%s4505_s6] sm:$0xff] (!%p701_p3)  ;;  %v1238_v29 = vld [vmem:[%s4505_s6 + $0x8] sm:$0xff] (!%p701_p3)  ;;  %3488 = vmatprep.subr.bf16.mxu0 (!%p701_p3), %v3781_v26  ;;  %v4116_v52 = vpack.c.bf16 (!%p701_p3), %v1333_v51, %v1332_v49  ;;  %v1336_v56 = vld [vmem:[%s4478_s16 + $0x30] sm:$0xff] (!%p701_p3) }
 0x64c   : > { %v1355_v32 = vrot.slane %v1238_v29, 7  ;;  %3030 = vmatprep.mubr.msk.f32.mxu0 %vm1248_vm4, %v1237_v25  ;;  %v1335_v54 = vld [vmem:[%s4478_s16 + $0x28] sm:$0xff]  ;;  %v1337_v57 = vld [vmem:[%s4478_s16 + $0x38] sm:$0xff]  ;;  %v1338_v59 = vld [vmem:[%s4478_s16 + $0x40] sm:$0xff] }
 0x64d   : > { %3031 = vmatmul.mubr.msk.f32.vlgmr.msra.gmra.mrb[0].mxu0 %vm1248_vm4, %v1238_v29  ;;  %v4126_v55 = vpack.c.bf16 %v1335_v54, %v1334_v53  ;;  %v4136_v58 = vpack.c.bf16 %v1337_v57, %v1336_v56  ;;  %v1339_v60 = vld [vmem:[%s4478_s16 + $0x48] sm:$0xff]  ;;  %v1340_v62 = vld [vmem:[%s4478_s16 + $0x50] sm:$0xff]  ;;  %v1341_v63 = vld [vmem:[%s4478_s16 + $0x58] sm:$0xff] }
 0x64e   : > { %v1358_v36 = vsel %vm1357_vm5, %v1237_v25, %v1355_v32  ;;  %3490 = vmatpush3.bf16.msra.mxu0 %v3489_v37  ;;  %3056 = vmatprep.mubr.msk.f32.mxu0 %vm3782_vm3, %v3783_v28  ;;  %v4146_v61 = vpack.c.bf16 %v1339_v60, %v1338_v59  ;;  %v4156_v0 = vpack.c.bf16 %v1341_v63, %v1340_v62  ;;  %v1342_v1 = vld [vmem:[%s4478_s16 + $0x60] sm:$0xff]  ;;  %v1343_v2 = vld [vmem:[%s4478_s16 + $0x68] sm:$0xff]  ;;  %v1345_v37 = vld [vmem:[%s4478_s16 + $0x78] sm:$0xff] }
 0x64f   : > { %3038 = vmatmul.mubr.msk.f32.vlgmr.msra.gmra.mrb[0].mxu1 %vm1248_vm4, %v1358_v36  ;;  %3491 = vmatprep.subr.bf16.mxu0 %v3781_v26  ;;  %v4166_v3 = vpack.c.bf16 %v1343_v2, %v1342_v1  ;;  %v2722_v4 = vld [vmem:[%s4475_s13] ss:$0 sm:$0xff]  ;;  %v1344_v36 = vld [vmem:[%s4478_s16 + $0x70] sm:$0xff]  ;;  %v1353_v56 = vld [vmem:[%s4481_s19 + $0x38] sm:$0xff] }
 0x650   : > { %3091 = vmatprep.mubr.msk.f32.mxu1 %vm3782_vm3, %v3783_v28  ;;  %3502 = vmatpush3.bf16.msra.mxu1 %v4110_v50  ;;  %v2719_v11 = vld [vmem:[%s4480_s18] ss:$0 sm:$0xff]  ;;  %v4205_v38 = vpack.c.bf16 %v1345_v37, %v1344_v36  ;;  %v1348_v41 = vld [vmem:[%s4481_s19 + $0x10] sm:$0xff] }
 0x651   : > { %3503 = vmatprep.subr.bf16.mxu1 %v3781_v26  ;;  %v1346_v39 = vld [vmem:[%s4481_s19] sm:$0xff]  ;;  %v1352_v54 = vld [vmem:[%s4481_s19 + $0x30] sm:$0xff] }
 0x652   : > { %3493 = vmatpush3.bf16.msra.mxu0 %v3492_v40  ;;  %v1347_v40 = vld [vmem:[%s4481_s19 + $0x8] sm:$0xff]  ;;  %v1350_v45 = vld [vmem:[%s4481_s19 + $0x20] sm:$0xff]  ;;  %v4258_v57 = vpack.c.bf16 %v1353_v56, %v1352_v54 }
 0x653   : > { %3494 = vmatprep.subr.bf16.mxu0 %v3781_v26  ;;  %v4218_v42 = vpack.c.bf16 %v1347_v40, %v1346_v39  ;;  %v2724_v48 = vld [vmem:[%s4506_s29] ss:$0 sm:$0xff] }
 0x654   : > { %3505 = vmatpush3.bf16.msra.mxu1 %v4116_v52  ;;  %v4286_v1 = vld [vmem:[%s4507_s25] ss:$0 sm:$0xff] }
 0x655   : > { %3506 = vmatprep.subr.bf16.mxu1 %v3781_v26 }
 0x656   : > { %3496 = vmatpush3.bf16.msra.mxu0 %v3495_v43  ;;  %v1349_v43 = vld [vmem:[%s4481_s19 + $0x18] sm:$0xff] }
 0x657   : > { %3497 = vmatprep.subr.bf16.mxu0 %v3781_v26  ;;  %v4224_v44 = vpack.c.bf16 %v1349_v43, %v1348_v41 }
 0x658   : > { %3508 = vmatpush3.bf16.msra.mxu1 %v4126_v55 }
 0x659   : > { %3509 = vmatprep.subr.bf16.mxu1 %v3781_v26 }
 0x65a   : > { %3499 = vmatpush3.bf16.msra.mxu0 %v3498_v46  ;;  %v1351_v46 = vld [vmem:[%s4481_s19 + $0x28] sm:$0xff] }
 0x65b   : > { %3524 = vmatprep.subr.bf16.mxu0 %v3781_v26  ;;  %v4234_v47 = vpack.c.bf16 %v1351_v46, %v1350_v45 }
 0x65c   : > { %3511 = vmatpush3.bf16.msra.mxu1 %v4136_v58 }
 0x65d   : > { %3512 = vmatprep.subr.bf16.mxu1 %v3781_v26 }
 0x660   : > { %3514 = vmatpush3.bf16.msra.mxu1 %v4146_v61 }
 0x661   : > { %3515 = vmatprep.subr.bf16.mxu1 %v3781_v26 }
 0x664   : > { %3517 = vmatpush3.bf16.msra.mxu1 %v4156_v0 }
 0x665   : > { %3518 = vmatprep.subr.bf16.mxu1 %v3781_v26 }
 0x668   : > { %3520 = vmatpush3.bf16.msra.mxu1 %v4166_v3 }
 0x669   : > { %3521 = vmatprep.subr.bf16.mxu1 %v3781_v26 }
 0x66c   : > { %3523 = vmatpush3.bf16.msra.mxu1 %v4205_v38 }
 0x66d   : > { %3560 = vmatprep.subr.bf16.mxu1 %v3781_v26 }
 0x720   : > { %v3032_v8 = vpop.f32.mrb[0].mxu0 }
 0x721   : > { %v1321_v10 = vpop.f32.mrb[1].mxu0  ;;  %v1327_v13 = vadd.f32 %v3032_v8, %v2719_v11 }
 0x722   : > { %v1437_v5 = vpop.f32.mrb[0].mxu1  ;;  %v1322_v12 = vadd.f32 %v2719_v11, %v1321_v10 }
 0x723   : > { %v1438_v6 = vadd.f32 %v2722_v4, %v1437_v5  ;;  %v3039_v7 = vpop.f32.mrb[1].mxu1  ;;  %v1692_v17 = vrot.slane %v1327_v13, 1  ;;  %v1843_v19 = vrot.slane %v1327_v13, 2  ;;  %v1994_v21 = vrot.slane %v1327_v13, 3 }
 0x724   : > { %v1534_v14 = vrot.slane %v1322_v12, 1  ;;  %v1689_v16 = vrot.slane %v1322_v12, 2  ;;  %v1841_v18 = vrot.slane %v1322_v12, 3  ;;  %v1992_v20 = vrot.slane %v1322_v12, 4 }
 0x725   : > { %v1441_v9 = vmax.f32 %v1438_v6, 0.0  ;;  %v2143_v22 = vrot.slane %v1322_v12, 5  ;;  %v2145_v24 = vrot.slane %v1327_v13, 4  ;;  %v2294_v25 = vrot.slane %v1322_v12, 6 }
 0x726   : > { %v1536_v15 = vsel %vm1357_vm5, %v1534_v14, %v1327_v13  ;;  %v4182_v23 = vsel %vm1357_vm5, %v1689_v16, %v1692_v17  ;;  %v2296_v27 = vrot.slane %v1327_v13, 5  ;;  %v4185_v29 = vsel %vm1357_vm5, %v1841_v18, %v1843_v19 }
 0x727   : > { %3057 = vmatmul.mubr.msk.f32.vlgmr.msra.gmra.mrb[2].mxu0 %vm1457_vm6, %v1441_v9  ;;  %v4188_v30 = vsel %vm1357_vm5, %v1992_v20, %v1994_v21  ;;  %v2445_v31 = vrot.slane %v1322_v12, 7  ;;  %v2447_v32 = vrot.slane %v1327_v13, 6  ;;  %v4191_v33 = vsel %vm1357_vm5, %v2143_v22, %v2145_v24 }
 0x728   : > { %3110 = vmatprep.mubr.msk.f32.mxu0 %vm3782_vm3, %v3783_v28  ;;  %v4194_v34 = vsel %vm1357_vm5, %v2294_v25, %v2296_v27  ;;  %3526 = vmatpush3.bf16.msra.mxu0 %v4218_v42 }
 0x729   : > { %v4197_v35 = vsel %vm1357_vm5, %v2445_v31, %v2447_v32  ;;  %3527 = vmatprep.subr.bf16.mxu0 %v3781_v26 }
 0x72c   : > { %3529 = vmatpush3.bf16.msra.mxu0 %v4224_v44 }
 0x72d   : > { %3530 = vmatprep.subr.bf16.mxu0 %v3781_v26 }
 0x730   : > { %3532 = vmatpush3.bf16.msra.mxu0 %v4234_v47 }
 0x731   : > { %3533 = vmatprep.subr.bf16.mxu0 %v3781_v26 }
 0x734   : > { %3535 = vmatpush3.bf16.msra.mxu0 %v4258_v57 }
 0x735   : > { %3536 = vmatprep.subr.bf16.mxu0 %v3781_v26 }
 0x7fa   : > { %v1527_v49 = vpop.f32.mrb[2].mxu0 }
 0x7fb   : > { %v1528_v51 = vadd.f32 %v2724_v48, %v1527_v49  ;;  %v3058_v53 = vpop.f32.mrb[3].mxu0 }
 0x7fd   : > { %1531 = vst [vmem:[%s3924_s3] sm:$0x1] %v1528_v51  ;;  %1532 = vst [vmem:[%s3924_s3 + $0x7] sm:$0x2] %v1528_v51  ;;  %3092 = vmatmul.mubr.f32.vlgmr.msra.gmra.mrb[2].mxu1 %v1528_v51 }
 0x7fe   : > { %3562 = vmatpush3.bf16.msra.mxu1 %v4218_v42  ;;  %3164 = vmatprep.mubr.msk.f32.mxu1 %vm3782_vm3, %v3783_v28 }
 0x7ff   : > { %3563 = vmatprep.subr.bf16.mxu1 %v3781_v26 }
 0x802   : > { %3565 = vmatpush3.bf16.msra.mxu1 %v4224_v44 }
 0x803   : > { %3566 = vmatprep.subr.bf16.mxu1 %v3781_v26 }
 0x806   : > { %3568 = vmatpush3.bf16.msra.mxu1 %v4234_v47 }
 0x807   : > { %3569 = vmatprep.subr.bf16.mxu1 %v3781_v26 }
 0x80a   : > { %3571 = vmatpush3.bf16.msra.mxu1 %v4258_v57 }
 0x80b   : > { %3572 = vmatprep.subr.bf16.mxu1 %v3781_v26 }
 0x8d0   : > { %v1603_v59 = vpop.f32.mrb[2].mxu1 }
 0x8d1   : > { %v1604_v60 = vadd.f32 %v1603_v59, %v1536_v15  ;;  %v3093_v62 = vpop.f32.mrb[3].mxu1 }
 0x8d3   : > { %v1607_v63 = vmax.f32 %v1604_v60, 0.0 }
 0x8d5   : > { %3111 = vmatmul.mubr.msk.f32.vlgmr.msra.gmra.mrb[4].mxu0 %vm1457_vm6, %v1607_v63 }
 0x8d6   : > { %3538 = vmatpush3.bf16.msra.mxu0 %v4110_v50  ;;  %3145 = vmatprep.mubr.msk.f32.mxu0 %vm3782_vm3, %v3783_v28 }
 0x8d7   : > { %3539 = vmatprep.subr.bf16.mxu0 %v3781_v26 }
 0x8da   : > { %3541 = vmatpush3.bf16.msra.mxu0 %v4116_v52 }
 0x8db   : > { %3542 = vmatprep.subr.bf16.mxu0 %v3781_v26 }
 0x8de   : > { %3544 = vmatpush3.bf16.msra.mxu0 %v4126_v55 }
 0x8df   : > { %3545 = vmatprep.subr.bf16.mxu0 %v3781_v26 }
 0x8e2   : > { %3547 = vmatpush3.bf16.msra.mxu0 %v4136_v58 }
 0x8e3   : > { %3548 = vmatprep.subr.bf16.mxu0 %v3781_v26 }
 0x8e6   : > { %3550 = vmatpush3.bf16.msra.mxu0 %v4146_v61 }
 0x8e7   : > { %3551 = vmatprep.subr.bf16.mxu0 %v3781_v26 }
 0x8ea   : > { %3553 = vmatpush3.bf16.msra.mxu0 %v4156_v0 }
 0x8eb   : > { %3554 = vmatprep.subr.bf16.mxu0 %v3781_v26 }
 0x8ee   : > { %3556 = vmatpush3.bf16.msra.mxu0 %v4166_v3 }
 0x8ef   : > { %3557 = vmatprep.subr.bf16.mxu0 %v3781_v26 }
 0x8f2   : > { %3559 = vmatpush3.bf16.msra.mxu0 %v4205_v38 }
 0x8f3   : > { %3596 = vmatprep.subr.bf16.mxu0 %v3781_v26 }
 0x9a8   : > { %v1683_v2 = vpop.f32.mrb[4].mxu0 }
 0x9a9   : > { %v1684_v4 = vadd.f32 %v4286_v1, %v1683_v2  ;;  %v3112_v5 = vpop.f32.mrb[5].mxu0 }
 0x9ab   : > { %1687 = vst [vmem:[%s3924_s3 + $0x1] sm:$0x1] %v1684_v4  ;;  %1688 = vst [vmem:[%s3924_s3 + $0x8] sm:$0x2] %v1684_v4  ;;  %3146 = vmatmul.mubr.f32.vlgmr.msra.gmra.mrb[6].mxu0 %v1684_v4 }
 0x9ac   : > { %3598 = vmatpush3.bf16.msra.mxu0 %v4218_v42  ;;  %3218 = vmatprep.mubr.msk.f32.mxu0 %vm3782_vm3, %v3783_v28 }
 0x9ad   : > { %3599 = vmatprep.subr.bf16.mxu0 %v3781_v26 }
 0x9b0   : > { %3601 = vmatpush3.bf16.msra.mxu0 %v4224_v44 }
 0x9b1   : > { %3602 = vmatprep.subr.bf16.mxu0 %v3781_v26 }
 0x9b4   : > { %3604 = vmatpush3.bf16.msra.mxu0 %v4234_v47 }
 0x9b5   : > { %3605 = vmatprep.subr.bf16.mxu0 %v3781_v26 }
 0x9b8   : > { %3607 = vmatpush3.bf16.msra.mxu0 %v4258_v57 }
 0x9b9   : > { %3608 = vmatprep.subr.bf16.mxu0 %v3781_v26 }
 0xa7e   : > { %v1761_v6 = vpop.f32.mrb[6].mxu0 }
 0xa7f   : > { %v1762_v7 = vadd.f32 %v1761_v6, %v4182_v23  ;;  %v3147_v8 = vpop.f32.mrb[7].mxu0 }
 0xa81   : > { %v1765_v9 = vmax.f32 %v1762_v7, 0.0 }
 0xa83   : > { %3165 = vmatmul.mubr.msk.f32.vlgmr.msra.gmra.mrb[4].mxu1 %vm1457_vm6, %v1765_v9 }
 0xa84   : > { %3574 = vmatpush3.bf16.msra.mxu1 %v4110_v50  ;;  %3199 = vmatprep.mubr.msk.f32.mxu1 %vm3782_vm3, %v3783_v28 }
 0xa85   : > { %3575 = vmatprep.subr.bf16.mxu1 %v3781_v26 }
 0xa88   : > { %3577 = vmatpush3.bf16.msra.mxu1 %v4116_v52 }
 0xa89   : > { %3578 = vmatprep.subr.bf16.mxu1 %v3781_v26 }
 0xa8c   : > { %3580 = vmatpush3.bf16.msra.mxu1 %v4126_v55 }
 0xa8d   : > { %3581 = vmatprep.subr.bf16.mxu1 %v3781_v26 }
 0xa90   : > { %3583 = vmatpush3.bf16.msra.mxu1 %v4136_v58 }
 0xa91   : > { %3584 = vmatprep.subr.bf16.mxu1 %v3781_v26 }
 0xa94   : > { %3586 = vmatpush3.bf16.msra.mxu1 %v4146_v61 }
 0xa95   : > { %3587 = vmatprep.subr.bf16.mxu1 %v3781_v26 }
 0xa98   : > { %3589 = vmatpush3.bf16.msra.mxu1 %v4156_v0 }
 0xa99   : > { %3590 = vmatprep.subr.bf16.mxu1 %v3781_v26 }
 0xa9c   : > { %3592 = vmatpush3.bf16.msra.mxu1 %v4166_v3 }
 0xa9d   : > { %3593 = vmatprep.subr.bf16.mxu1 %v3781_v26 }
 0xaa0   : > { %3595 = vmatpush3.bf16.msra.mxu1 %v4205_v38 }
 0xaa1   : > { %3632 = vmatprep.subr.bf16.mxu1 %v3781_v26 }
 0xb56   : > { %v1835_v10 = vpop.f32.mrb[4].mxu1 }
 0xb57   : > { %v1836_v11 = vadd.f32 %v4286_v1, %v1835_v10  ;;  %v3166_v12 = vpop.f32.mrb[5].mxu1 }
 0xb59   : > { %1839 = vst [vmem:[%s3924_s3 + $0x2] sm:$0x1] %v1836_v11  ;;  %1840 = vst [vmem:[%s3924_s3 + $0x9] sm:$0x2] %v1836_v11  ;;  %3200 = vmatmul.mubr.f32.vlgmr.msra.gmra.mrb[6].mxu1 %v1836_v11 }
 0xb5a   : > { %3634 = vmatpush3.bf16.msra.mxu1 %v4218_v42  ;;  %3272 = vmatprep.mubr.msk.f32.mxu1 %vm3782_vm3, %v3783_v28 }
 0xb5b   : > { %3635 = vmatprep.subr.bf16.mxu1 %v3781_v26 }
 0xb5e   : > { %3637 = vmatpush3.bf16.msra.mxu1 %v4224_v44 }
 0xb5f   : > { %3638 = vmatprep.subr.bf16.mxu1 %v3781_v26 }
 0xb62   : > { %3640 = vmatpush3.bf16.msra.mxu1 %v4234_v47 }
 0xb63   : > { %3641 = vmatprep.subr.bf16.mxu1 %v3781_v26 }
 0xb66   : > { %3643 = vmatpush3.bf16.msra.mxu1 %v4258_v57 }
 0xb67   : > { %3644 = vmatprep.subr.bf16.mxu1 %v3781_v26 }
 0xc2c   : > { %v1912_v13 = vpop.f32.mrb[6].mxu1 }
 0xc2d   : > { %v1913_v14 = vadd.f32 %v1912_v13, %v4185_v29  ;;  %v3201_v15 = vpop.f32.mrb[7].mxu1 }
 0xc2f   : > { %v1916_v16 = vmax.f32 %v1913_v14, 0.0 }
 0xc31   : > { %3219 = vmatmul.mubr.msk.f32.vlgmr.msra.gmra.mrb[8].mxu0 %vm1457_vm6, %v1916_v16 }
 0xc32   : > { %3610 = vmatpush3.bf16.msra.mxu0 %v4110_v50  ;;  %3253 = vmatprep.mubr.msk.f32.mxu0 %vm3782_vm3, %v3783_v28 }
 0xc33   : > { %3611 = vmatprep.subr.bf16.mxu0 %v3781_v26 }
 0xc36   : > { %3613 = vmatpush3.bf16.msra.mxu0 %v4116_v52 }
 0xc37   : > { %3614 = vmatprep.subr.bf16.mxu0 %v3781_v26 }
 0xc3a   : > { %3616 = vmatpush3.bf16.msra.mxu0 %v4126_v55 }
 0xc3b   : > { %3617 = vmatprep.subr.bf16.mxu0 %v3781_v26 }
 0xc3e   : > { %3619 = vmatpush3.bf16.msra.mxu0 %v4136_v58 }
 0xc3f   : > { %3620 = vmatprep.subr.bf16.mxu0 %v3781_v26 }
 0xc42   : > { %3622 = vmatpush3.bf16.msra.mxu0 %v4146_v61 }
 0xc43   : > { %3623 = vmatprep.subr.bf16.mxu0 %v3781_v26 }
 0xc46   : > { %3625 = vmatpush3.bf16.msra.mxu0 %v4156_v0 }
 0xc47   : > { %3626 = vmatprep.subr.bf16.mxu0 %v3781_v26 }
 0xc4a   : > { %3628 = vmatpush3.bf16.msra.mxu0 %v4166_v3 }
 0xc4b   : > { %3629 = vmatprep.subr.bf16.mxu0 %v3781_v26 }
 0xc4e   : > { %3631 = vmatpush3.bf16.msra.mxu0 %v4205_v38 }
 0xc4f   : > { %3668 = vmatprep.subr.bf16.mxu0 %v3781_v26 }
 0xd04   : > { %v1986_v17 = vpop.f32.mrb[8].mxu0 }
 0xd05   : > { %v1987_v18 = vadd.f32 %v4286_v1, %v1986_v17  ;;  %v3220_v19 = vpop.f32.mrb[9].mxu0 }
 0xd07   : > { %1990 = vst [vmem:[%s3924_s3 + $0x3] sm:$0x1] %v1987_v18  ;;  %1991 = vst [vmem:[%s3924_s3 + $0xa] sm:$0x2] %v1987_v18  ;;  %3254 = vmatmul.mubr.f32.vlgmr.msra.gmra.mrb[10].mxu0 %v1987_v18 }
 0xd08   : > { %3670 = vmatpush3.bf16.msra.mxu0 %v4218_v42  ;;  %3326 = vmatprep.mubr.msk.f32.mxu0 %vm3782_vm3, %v3783_v28 }
 0xd09   : > { %3671 = vmatprep.subr.bf16.mxu0 %v3781_v26 }
 0xd0c   : > { %3673 = vmatpush3.bf16.msra.mxu0 %v4224_v44 }
 0xd0d   : > { %3674 = vmatprep.subr.bf16.mxu0 %v3781_v26 }
 0xd10   : > { %3676 = vmatpush3.bf16.msra.mxu0 %v4234_v47 }
 0xd11   : > { %3677 = vmatprep.subr.bf16.mxu0 %v3781_v26 }
 0xd14   : > { %3679 = vmatpush3.bf16.msra.mxu0 %v4258_v57 }
 0xd15   : > { %3680 = vmatprep.subr.bf16.mxu0 %v3781_v26 }
 0xdda   : > { %v2063_v20 = vpop.f32.mrb[10].mxu0 }
 0xddb   : > { %v2064_v21 = vadd.f32 %v2063_v20, %v4188_v30  ;;  %v3255_v22 = vpop.f32.mrb[11].mxu0 }
 0xddd   : > { %v2067_v23 = vmax.f32 %v2064_v21, 0.0 }
 0xddf   : > { %3273 = vmatmul.mubr.msk.f32.vlgmr.msra.gmra.mrb[8].mxu1 %vm1457_vm6, %v2067_v23 }
 0xde0   : > { %3646 = vmatpush3.bf16.msra.mxu1 %v4110_v50  ;;  %3307 = vmatprep.mubr.msk.f32.mxu1 %vm3782_vm3, %v3783_v28 }
 0xde1   : > { %3647 = vmatprep.subr.bf16.mxu1 %v3781_v26 }
 0xde4   : > { %3649 = vmatpush3.bf16.msra.mxu1 %v4116_v52 }
 0xde5   : > { %3650 = vmatprep.subr.bf16.mxu1 %v3781_v26 }
 0xde8   : > { %3652 = vmatpush3.bf16.msra.mxu1 %v4126_v55 }
 0xde9   : > { %3653 = vmatprep.subr.bf16.mxu1 %v3781_v26 }
 0xdec   : > { %3655 = vmatpush3.bf16.msra.mxu1 %v4136_v58 }
 0xded   : > { %3656 = vmatprep.subr.bf16.mxu1 %v3781_v26 }
 0xdf0   : > { %3658 = vmatpush3.bf16.msra.mxu1 %v4146_v61 }
 0xdf1   : > { %3659 = vmatprep.subr.bf16.mxu1 %v3781_v26 }
 0xdf4   : > { %3661 = vmatpush3.bf16.msra.mxu1 %v4156_v0 }
 0xdf5   : > { %3662 = vmatprep.subr.bf16.mxu1 %v3781_v26 }
 0xdf8   : > { %3664 = vmatpush3.bf16.msra.mxu1 %v4166_v3 }
 0xdf9   : > { %3665 = vmatprep.subr.bf16.mxu1 %v3781_v26 }
 0xdfc   : > { %3667 = vmatpush3.bf16.msra.mxu1 %v4205_v38 }
 0xdfd   : > { %3704 = vmatprep.subr.bf16.mxu1 %v3781_v26 }
 0xeb2   : > { %v2137_v24 = vpop.f32.mrb[8].mxu1 }
 0xeb3   : > { %v2138_v25 = vadd.f32 %v4286_v1, %v2137_v24  ;;  %v3274_v27 = vpop.f32.mrb[9].mxu1 }
 0xeb5   : > { %2141 = vst [vmem:[%s3924_s3 + $0x4] sm:$0x1] %v2138_v25  ;;  %2142 = vst [vmem:[%s3924_s3 + $0xb] sm:$0x2] %v2138_v25  ;;  %3308 = vmatmul.mubr.f32.vlgmr.msra.gmra.mrb[10].mxu1 %v2138_v25 }
 0xeb6   : > { %3706 = vmatpush3.bf16.msra.mxu1 %v4218_v42  ;;  %3380 = vmatprep.mubr.msk.f32.mxu1 %vm3782_vm3, %v3783_v28 }
 0xeb7   : > { %3707 = vmatprep.subr.bf16.mxu1 %v3781_v26 }
 0xeba   : > { %3709 = vmatpush3.bf16.msra.mxu1 %v4224_v44 }
 0xebb   : > { %3710 = vmatprep.subr.bf16.mxu1 %v3781_v26 }
 0xebe   : > { %3712 = vmatpush3.bf16.msra.mxu1 %v4234_v47 }
 0xebf   : > { %3713 = vmatprep.subr.bf16.mxu1 %v3781_v26 }
 0xec2   : > { %3715 = vmatpush3.bf16.msra.mxu1 %v4258_v57 }
 0xec3   : > { %3716 = vmatprep.subr.bf16.mxu1 %v3781_v26 }
 0xf88   : > { %v2214_v29 = vpop.f32.mrb[10].mxu1 }
 0xf89   : > { %v2215_v30 = vadd.f32 %v2214_v29, %v4191_v33  ;;  %v3309_v31 = vpop.f32.mrb[11].mxu1 }
 0xf8b   : > { %v2218_v32 = vmax.f32 %v2215_v30, 0.0 }
 0xf8d   : > { %3327 = vmatmul.mubr.msk.f32.vlgmr.msra.gmra.mrb[12].mxu0 %vm1457_vm6, %v2218_v32 }
 0xf8e   : > { %3682 = vmatpush3.bf16.msra.mxu0 %v4110_v50  ;;  %3361 = vmatprep.mubr.msk.f32.mxu0 %vm3782_vm3, %v3783_v28 }
 0xf8f   : > { %3683 = vmatprep.subr.bf16.mxu0 %v3781_v26 }
 0xf92   : > { %3685 = vmatpush3.bf16.msra.mxu0 %v4116_v52 }
 0xf93   : > { %3686 = vmatprep.subr.bf16.mxu0 %v3781_v26 }
 0xf96   : > { %3688 = vmatpush3.bf16.msra.mxu0 %v4126_v55 }
 0xf97   : > { %3689 = vmatprep.subr.bf16.mxu0 %v3781_v26 }
 0xf9a   : > { %3691 = vmatpush3.bf16.msra.mxu0 %v4136_v58 }
 0xf9b   : > { %3692 = vmatprep.subr.bf16.mxu0 %v3781_v26 }
 0xf9e   : > { %3694 = vmatpush3.bf16.msra.mxu0 %v4146_v61 }
 0xf9f   : > { %3695 = vmatprep.subr.bf16.mxu0 %v3781_v26 }
 0xfa2   : > { %3697 = vmatpush3.bf16.msra.mxu0 %v4156_v0 }
 0xfa3   : > { %3698 = vmatprep.subr.bf16.mxu0 %v3781_v26 }
 0xfa6   : > { %3700 = vmatpush3.bf16.msra.mxu0 %v4166_v3 }
 0xfa7   : > { %3701 = vmatprep.subr.bf16.mxu0 %v3781_v26 }
 0xfaa   : > { %3703 = vmatpush3.bf16.msra.mxu0 %v4205_v38 }
 0xfab   : > { %3740 = vmatprep.subr.bf16.mxu0 %v3781_v26 }
0x1060   : > { %v2288_v33 = vpop.f32.mrb[12].mxu0 }
0x1061   : > { %v2289_v36 = vadd.f32 %v4286_v1, %v2288_v33  ;;  %v3328_v37 = vpop.f32.mrb[13].mxu0 }
0x1063   : > { %2292 = vst [vmem:[%s3924_s3 + $0x5] sm:$0x1] %v2289_v36  ;;  %2293 = vst [vmem:[%s3924_s3 + $0xc] sm:$0x2] %v2289_v36  ;;  %3362 = vmatmul.mubr.f32.vlgmr.msra.gmra.mrb[14].mxu0 %v2289_v36 }
0x1064   : > { %3742 = vmatpush3.bf16.msra.mxu0 %v4218_v42  ;;  %3434 = vmatprep.mubr.msk.f32.mxu0 %vm3782_vm3, %v3783_v28 }
0x1065   : > { %3743 = vmatprep.subr.bf16.mxu0 %v3781_v26 }
0x1068   : > { %3745 = vmatpush3.bf16.msra.mxu0 %v4224_v44 }
0x1069   : > { %3746 = vmatprep.subr.bf16.mxu0 %v3781_v26 }
0x106c   : > { %3748 = vmatpush3.bf16.msra.mxu0 %v4234_v47 }
0x106d   : > { %3749 = vmatprep.subr.bf16.mxu0 %v3781_v26 }
0x1070   : > { %3751 = vmatpush3.bf16.msra.mxu0 %v4258_v57 }
0x1136   : > { %v2365_v39 = vpop.f32.mrb[14].mxu0 }
0x1137   : > { %v2366_v40 = vadd.f32 %v2365_v39, %v4194_v34  ;;  %v3363_v41 = vpop.f32.mrb[15].mxu0 }
0x1139   : > { %v2369_v42 = vmax.f32 %v2366_v40, 0.0 }
0x113b   : > { %3381 = vmatmul.mubr.msk.f32.vlgmr.msra.gmra.mrb[12].mxu1 %vm1457_vm6, %v2369_v42 }
0x113c   : > { %3718 = vmatpush3.bf16.msra.mxu1 %v4110_v50  ;;  %3415 = vmatprep.mubr.msk.f32.mxu1 %vm3782_vm3, %v3783_v28 }
0x113d   : > { %3719 = vmatprep.subr.bf16.mxu1 %v3781_v26 }
0x1140   : > { %3721 = vmatpush3.bf16.msra.mxu1 %v4116_v52 }
0x1141   : > { %3722 = vmatprep.subr.bf16.mxu1 %v3781_v26 }
0x1144   : > { %3724 = vmatpush3.bf16.msra.mxu1 %v4126_v55 }
0x1145   : > { %3725 = vmatprep.subr.bf16.mxu1 %v3781_v26 }
0x1148   : > { %3727 = vmatpush3.bf16.msra.mxu1 %v4136_v58 }
0x1149   : > { %3728 = vmatprep.subr.bf16.mxu1 %v3781_v26 }
0x114c   : > { %3730 = vmatpush3.bf16.msra.mxu1 %v4146_v61 }
0x114d   : > { %3731 = vmatprep.subr.bf16.mxu1 %v3781_v26 }
0x1150   : > { %3733 = vmatpush3.bf16.msra.mxu1 %v4156_v0 }
0x1151   : > { %3734 = vmatprep.subr.bf16.mxu1 %v3781_v26 }
0x1154   : > { %3736 = vmatpush3.bf16.msra.mxu1 %v4166_v3 }
0x1155   : > { %3737 = vmatprep.subr.bf16.mxu1 %v3781_v26 }
0x1158   : > { %3739 = vmatpush3.bf16.msra.mxu1 %v4205_v38 }
0x120e   : > { %v2439_v28 = vpop.f32.mrb[12].mxu1 }
0x120f   : > { %v2440_v50 = vadd.f32 %v4286_v1, %v2439_v28  ;;  %v3382_v52 = vpop.f32.mrb[13].mxu1 }
0x1211   : > { %2443 = vst [vmem:[%s3924_s3 + $0x6] sm:$0x1] %v2440_v50  ;;  %2444 = vst [vmem:[%s3924_s3 + $0xd] sm:$0x2] %v2440_v50  ;;  %3416 = vmatmul.mubr.f32.vlgmr.msra.gmra.mrb[14].mxu1 %v2440_v50 }
0x12e4   : > { %v2516_v55 = vpop.f32.mrb[14].mxu1 }
0x12e5   : > { %v2517_v58 = vadd.f32 %v2516_v55, %v4197_v35  ;;  %v3417_v61 = vpop.f32.mrb[15].mxu1 }
0x12e7   : > { %v2520_v0 = vmax.f32 %v2517_v58, 0.0 }
0x12e9   : > { %3435 = vmatmul.mubr.msk.f32.vlgmr.msra.gmra.mrb[16].mxu0 %vm1457_vm6, %v2520_v0 }
0x13bc   : > { %v2590_v3 = vpop.f32.mrb[16].mxu0 }
0x13bd   : > { %v2591_v26 = vadd.f32 %v4286_v1, %v2590_v3  ;;  %v3436_v34 = vpop.f32.mrb[17].mxu0 }
0x13bf   : > { %2594 = vst [vmem:[%s3924_s3 + $0x7] sm:$0x1] %v2591_v26  ;;  %2595 = vst [vmem:[%s3924_s3 + $0xe] sm:$0x2] %v2591_v26 }
0x13c0 PF: > { %s4508_s20 = sld [smem:[#allocation2_spill]] }
0x13c6   : > { %s33_s3 = sadd.s32 1, %s4508_s20  }
0x13c7   : > { %p30_p7 = scmp.ge.s32.totalorder %s33_s3, 4  }
0x13c9   :  { %32 = sbr.rel (!%p30_p7) target bundleno = 10 (0xa), region = 154 }

</bundles_post_ra>
